<compile_context>
chip_gen: v6e
topology: v6e:2x2x1
jax: 0.10.0
libtpu: 0.0.40
codegen_flags: <defaults>
</compile_context>

<pallas_src>
import functools

import jax
import jax.numpy as jnp
import numpy as np
from jax import lax
from jax.experimental import pallas as pl
from jax.experimental.pallas import tpu as pltpu


def _round_up(x, m):
    return (x + m - 1) // m * m


def _temporal_block_kernel(x_ref, w1_ref, b1_ref, w2_ref, b2_ref, *rest,
                           K, dilation, pad, pad_al, l_tile, use_downsample):
    """One (batch, time-tile) grid cell.

    x_ref  : (1, l_tile, C_in_p)   f32 input tile (channels-last)
    w1_ref : (K*C_in_p, C_out_p)   conv1 weight (f32 or bf16), tap-major rows
    b1_ref : (1, C_out_p)          f32
    w2_ref : (K*C_out_p, C_out_p)  conv2 weight
    b2_ref : (1, C_out_p)          f32
    [wd_ref: (C_in_p, C_out_p), bd_ref: (1, C_out_p)]   iff use_downsample
    o_ref  : (1, l_tile, C_out_p)  f32
    x_ext  : (pad_al + l_tile, C_in_p)  f32 scratch: causal x halo + tile
    h1_ext : (pad_al + l_tile, C_out_p) scratch (activation dtype): h1 halo + tile
    """
    if use_downsample:
        wd_ref, bd_ref, o_ref, x_ext, h1_ext = rest
    else:
        o_ref, x_ext, h1_ext = rest

    lt = pl.program_id(1)
    c_in_p = x_ext.shape[1]
    c_out_p = h1_ext.shape[1]
    cdt = w1_ref.dtype            # MXU operand dtype (bf16 when use_bf16)

    # ---- causal halo: zeros at sequence start, else carry the previous
    #      tile's tail.  Scratch persists across grid steps; the time axis
    #      MUST stay innermost and "arbitrary" (sequential) for this to hold.
    @pl.when(lt == 0)
    def _():
        x_ext[pl.ds(0, pad_al), :] = jnp.zeros((pad_al, c_in_p), x_ext.dtype)
        h1_ext[pl.ds(0, pad_al), :] = jnp.zeros((pad_al, c_out_p), h1_ext.dtype)

    @pl.when(lt > 0)
    def _():
        x_ext[pl.ds(0, pad_al), :] = x_ext[pl.ds(l_tile, pad_al), :]
        h1_ext[pl.ds(0, pad_al), :] = h1_ext[pl.ds(l_tile, pad_al), :]

    # Stage the current tile behind the halo (single aligned store).  Keeping
    # x/h1 in one contiguous extended buffer lets every tap below be a plain
    # ref-slice operand load instead of a materialized shifted copy.
    x_ext[pl.ds(pad_al, l_tile), :] = x_ref[0]

    base = pad_al - pad                      # static first-tap offset

    def causal_dilated_conv(src_ref, w_ref, b_ref, c_src):
        # Per-tap accumulation (review #1): K thin (l_tile, C)@(C, C_out)
        # matmuls with contraction dim >= 128, accumulated in f32.  No
        # (l_tile, K*C) im2col temporary is ever materialized.
        acc = None
        for k in range(K):
            a_k = src_ref[pl.ds(base + k * dilation, l_tile), :].astype(cdt)
            w_k = w_ref[pl.ds(k * c_src, c_src), :]
            p_k = jnp.dot(a_k, w_k, preferred_element_type=jnp.float32)
            acc = p_k if acc is None else acc + p_k
        return acc + b_ref[...]

    # ---- conv1 -> chomp (implicit via causal windows) -> relu -> dropout(id)
    h1 = jnp.maximum(causal_dilated_conv(x_ext, w1_ref, b1_ref, c_in_p), 0.0)
    h1_ext[pl.ds(pad_al, l_tile), :] = h1.astype(h1_ext.dtype)

    # ---- conv2 -> chomp -> relu -> dropout(id)
    h2 = jnp.maximum(causal_dilated_conv(h1_ext, w2_ref, b2_ref, c_out_p), 0.0)

    # ---- residual path + final relu
    x_cur = x_ext[pl.ds(pad_al, l_tile), :]
    if use_downsample:
        res = jnp.dot(x_cur.astype(cdt), wd_ref[...],
                      preferred_element_type=jnp.float32) + bd_ref[...]
    else:
        res = x_cur

    o_ref[0] = jnp.maximum(h2 + res, 0.0)


def _pick_l_tile(L, pad_al, C_in_p, C_out_p, K, use_downsample,
                 l_tile_target, w_bytes, act_bytes):
    """Generation-aware time tile (review #5): largest tile whose resident
    VMEM estimate fits the device's actual capacity (v7x: 64 MiB/TC)."""
    try:
        vmem_cap = int(pltpu.get_tpu_info().vmem_capacity_bytes)
    except Exception:
        vmem_cap = 64 * 1024 * 1024      # conservative (v7x per-TC)
    budget = min(int(0.70 * vmem_cap), 96 * 1024 * 1024)

    # Constant operands — assume double-buffered (conservative even when the
    # Buffered(1) single-buffer hint is honoured).
    const_b = 2 * w_bytes * (K * C_in_p * C_out_p + K * C_out_p * C_out_p
                             + (C_in_p * C_out_p if use_downsample else 0))

    def resident(l_tile):
        io_b = 2 * 4 * l_tile * (C_in_p + C_out_p)              # in/out 2-deep
        scr_b = (pad_al + l_tile) * (4 * C_in_p + act_bytes * C_out_p)
        tmp_b = 4 * l_tile * (C_in_p + 3 * C_out_p)             # acc/operand temps
        return const_b + io_b + scr_b + tmp_b

    l_tile = max(pad_al, min(_round_up(L, 8), _round_up(max(l_tile_target, 8), 8)))
    while l_tile > max(pad_al, 8) and resident(l_tile) > budget:
        l_tile = max(max(pad_al, 8), _round_up(l_tile // 2, 8))
    vmem_limit = min(vmem_cap, max(budget, resident(l_tile)) + (8 << 20))
    return l_tile, int(vmem_limit)


def temporal_block_nlc(x_nlc, w1, b1, w2, b2, wd=None, bd=None, *,
                       kernel_size, dilation, l_tile_target=1024,
                       use_bf16=False):
    """Channels-last core: x (N, L, C_in) f32 -> (N, L, C_out) f32.

    Stacked TCN blocks should call this directly (review #9) so the
    NCL<->NLC transpose is paid once per network, not once per block.

    w1: (K, C_in, C_out), w2: (K, C_out, C_out), b1/b2: (C_out,)
    wd: (C_in, C_out), bd: (C_out,)  -- only used when C_in != C_out.
    """
    N, L, C_in = x_nlc.shape
    K = kernel_size
    C_out = w1.shape[2]
    pad = (K - 1) * dilation
    use_downsample = C_in != C_out

    C_in_p = _round_up(C_in, 128)
    C_out_p = _round_up(C_out, 128)
    pad_al = _round_up(max(pad, 1), 8)       # sublane-aligned halo rows

    w_dtype = jnp.bfloat16 if use_bf16 else jnp.float32
    act_dtype = jnp.bfloat16 if use_bf16 else jnp.float32
    w_bytes = 2 if use_bf16 else 4
    act_bytes = 2 if use_bf16 else 4

    l_tile, vmem_limit = _pick_l_tile(
        L, pad_al, C_in_p, C_out_p, K, use_downsample,
        l_tile_target, w_bytes, act_bytes)
    L_p = _round_up(L, l_tile)
    n_lt = L_p // l_tile

    # ---- channel / time zero-padding (semantically inert) ----
    x_p = jnp.pad(x_nlc, ((0, 0), (0, L_p - L), (0, C_in_p - C_in)))

    # Weights cast + tap-major flattened ONCE in the wrapper (review #4): no
    # per-grid-step weight casts inside the kernel; biases stay f32.
    w1_f = jnp.pad(w1, ((0, 0), (0, C_in_p - C_in), (0, C_out_p - C_out))
                   ).reshape(K * C_in_p, C_out_p).astype(w_dtype)
    w2_f = jnp.pad(w2, ((0, 0), (0, C_out_p - C_out), (0, C_out_p - C_out))
                   ).reshape(K * C_out_p, C_out_p).astype(w_dtype)
    b1_p = jnp.pad(b1.reshape(1, -1), ((0, 0), (0, C_out_p - C_out)))
    b2_p = jnp.pad(b2.reshape(1, -1), ((0, 0), (0, C_out_p - C_out)))

    args = [x_p, w1_f, b1_p, w2_f, b2_p]
    const_shapes = [w1_f.shape, b1_p.shape, w2_f.shape, b2_p.shape]
    if use_downsample:
        wd_p = jnp.pad(wd, ((0, C_in_p - C_in), (0, C_out_p - C_out))
                       ).astype(w_dtype)
        bd_p = jnp.pad(bd.reshape(1, -1), ((0, 0), (0, C_out_p - C_out)))
        args += [wd_p, bd_p]
        const_shapes += [wd_p.shape, bd_p.shape]

    kernel = functools.partial(
        _temporal_block_kernel, K=K, dilation=dilation, pad=pad,
        pad_al=pad_al, l_tile=l_tile, use_downsample=use_downsample)

    flops = 2 * N * L_p * (K * C_in_p * C_out_p + K * C_out_p * C_out_p
                           + (C_in_p * C_out_p if use_downsample else 0))
    bytes_accessed = (4 * x_p.size + 4 * N * L_p * C_out_p
                      + w_bytes * (w1_f.size + w2_f.size)
                      + 4 * (b1_p.size + b2_p.size)
                      + (w_bytes * C_in_p * C_out_p + 4 * C_out_p
                         if use_downsample else 0))

    def run(single_buffer_consts):
        def const_spec(shape):
            # Constant-index operands: single-buffer (review #3) so weights
            # are resident once, not twice (matters on v7x's 64 MiB VMEM).
            if single_buffer_consts:
                return pl.BlockSpec(shape, lambda n, t: (0,) * len(shape),
                                    pipeline_mode=pl.Buffered(1))
            return pl.BlockSpec(shape, lambda n, t: (0,) * len(shape))

        in_specs = [pl.BlockSpec((1, l_tile, C_in_p), lambda n, t: (n, t, 0))]
        in_specs += [const_spec(s) for s in const_shapes]

        return pl.pallas_call(
            kernel,
            out_shape=jax.ShapeDtypeStruct((N, L_p, C_out_p), jnp.float32),
            grid=(N, n_lt),
            in_specs=in_specs,
            out_specs=pl.BlockSpec((1, l_tile, C_out_p),
                                   lambda n, t: (n, t, 0)),
            scratch_shapes=[
                pltpu.VMEM((pad_al + l_tile, C_in_p), jnp.float32),
                pltpu.VMEM((pad_al + l_tile, C_out_p), act_dtype),
            ],
            compiler_params=pltpu.CompilerParams(
                # batch is independent (megacore-sharded); the time-tile axis
                # carries the causal halo in scratch and must stay sequential.
                dimension_semantics=("parallel", "arbitrary"),
                vmem_limit_bytes=vmem_limit,
            ),
            cost_estimate=pl.CostEstimate(
                flops=flops, transcendentals=0,
                bytes_accessed=int(bytes_accessed)),
        )(*args)

    try:
        out_nlc = run(True)
    except Exception:
        # pl.Buffered(1) single-buffering not available on this JAX build;
        # fall back to default double-buffered constant operands.
        out_nlc = run(False)

    return out_nlc[:, :L, :C_out]


def temporal_block(x_ncl, w1, b1, w2, b2, wd=None, bd=None, *,
                   kernel_size, dilation, l_tile_target=1024, use_bf16=False):
    """PyTorch-convention entry: x (N, C_in, L) f32 -> (N, C_out, L) f32."""
    x_nlc = jnp.transpose(x_ncl, (0, 2, 1))
    y_nlc = temporal_block_nlc(x_nlc, w1, b1, w2, b2, wd, bd,
                               kernel_size=kernel_size, dilation=dilation,
                               l_tile_target=l_tile_target, use_bf16=use_bf16)
    return jnp.transpose(y_nlc, (0, 2, 1))


def _reference(x_ncl, w1, b1, w2, b2, wd, bd, *, kernel_size, dilation):
    """Pure-JAX reference mirroring the PyTorch forward (eval mode)."""
    pad = (kernel_size - 1) * dilation
    C_in = x_ncl.shape[1]
    C_out = w1.shape[2]

    def conv1d(x, w_kio, b, dil):
        w_oih = jnp.transpose(w_kio, (2, 1, 0))          # (K,Ci,Co)->(Co,Ci,K)
        y = lax.conv_general_dilated(
            x, w_oih, window_strides=(1,), padding=[(pad, pad)],
            rhs_dilation=(dil,), dimension_numbers=("NCH", "OIH", "NCH"))
        return y + b.reshape(1, -1, 1)

    out = conv1d(x_ncl, w1, b1, dilation)[:, :, :-pad]   # chomp1
    out = jnp.maximum(out, 0.0)
    out = conv1d(out, w2, b2, dilation)[:, :, :-pad]     # chomp2
    out = jnp.maximum(out, 0.0)
    if C_in != C_out:
        res = jnp.einsum("ncl,co->nol", x_ncl, wd) + bd.reshape(1, -1, 1)
    else:
        res = x_ncl
    return jnp.maximum(out + res, 0.0)


if __name__ == "__main__":
    key = jax.random.PRNGKey(0)

    # --- Test 1: C_in != C_out (downsample path), two time tiles (halo carry).
    N, C_in, C_out, L = 2, 4, 8, 16
    K, dilation = 3, 2
    kx, k1, kb1, k2, kb2, kd, kbd, key = jax.random.split(key, 8)
    x = jax.random.normal(kx, (N, C_in, L), jnp.float32)
    w1 = jax.random.normal(k1, (K, C_in, C_out), jnp.float32) * 0.3
    b1 = jax.random.normal(kb1, (C_out,), jnp.float32) * 0.1
    w2 = jax.random.normal(k2, (K, C_out, C_out), jnp.float32) * 0.3
    b2 = jax.random.normal(kb2, (C_out,), jnp.float32) * 0.1
    wd = jax.random.normal(kd, (C_in, C_out), jnp.float32) * 0.3
    bd = jax.random.normal(kbd, (C_out,), jnp.float32) * 0.1

    y_ref = _reference(x, w1, b1, w2, b2, wd, bd,
                       kernel_size=K, dilation=dilation)

    y = temporal_block(x, w1, b1, w2, b2, wd, bd,
                       kernel_size=K, dilation=dilation, l_tile_target=8)
    y = jax.block_until_ready(y)
    np.testing.assert_allclose(np.asarray(y), np.asarray(y_ref),
                               rtol=1e-5, atol=1e-5)

    # --- Test 2: C_in == C_out (identity residual), single time tile.
    N2, C2, L2 = 2, 8, 24
    K2, dil2 = 2, 1
    kx, k1, kb1, k2, kb2, key = jax.random.split(key, 6)
    x2 = jax.random.normal(kx, (N2, C2, L2), jnp.float32)
    w1b = jax.random.normal(k1, (K2, C2, C2), jnp.float32) * 0.3
    b1b = jax.random.normal(kb1, (C2,), jnp.float32) * 0.1
    w2b = jax.random.normal(k2, (K2, C2, C2), jnp.float32) * 0.3
    b2b = jax.random.normal(kb2, (C2,), jnp.float32) * 0.1

    y2 = temporal_block(x2, w1b, b1b, w2b, b2b,
                        kernel_size=K2, dilation=dil2)
    y2 = jax.block_until_ready(y2)
    y2_ref = _reference(x2, w1b, b1b, w2b, b2b, None, None,
                        kernel_size=K2, dilation=dil2)
    np.testing.assert_allclose(np.asarray(y2), np.asarray(y2_ref),
                               rtol=1e-5, atol=1e-5)

    # --- Test 3: bf16 MXU path (review #4) — looser tolerance by design.
    y3 = temporal_block(x, w1, b1, w2, b2, wd, bd,
                        kernel_size=K, dilation=dilation, l_tile_target=8,
                        use_bf16=True)
    y3 = jax.block_until_ready(y3)
    np.testing.assert_allclose(np.asarray(y3), np.asarray(y_ref),
                               rtol=5e-2, atol=5e-2)

    print("KERNEL_OK")
</pallas_src>

<mosaic_0001>
module attributes {stable_mosaic.version = 11 : i64} {
  func.func @_temporal_block_kernel(%arg0: i32, %arg1: i32, %arg2: memref<1x8x128xf32, #tpu.memory_space<vmem>>, %arg3: memref<384x128xf32, #tpu.memory_space<vmem>>, %arg4: memref<1x128xf32, #tpu.memory_space<vmem>>, %arg5: memref<384x128xf32, #tpu.memory_space<vmem>>, %arg6: memref<1x128xf32, #tpu.memory_space<vmem>>, %arg7: memref<128x128xf32, #tpu.memory_space<vmem>>, %arg8: memref<1x128xf32, #tpu.memory_space<vmem>>, %arg9: memref<1x8x128xf32, #tpu.memory_space<vmem>>, %arg10: memref<16x128xf32, #tpu.memory_space<vmem>>, %arg11: memref<16x128xf32, #tpu.memory_space<vmem>>) attributes {dimension_semantics = [#tpu.dimension_semantics<parallel>, #tpu.dimension_semantics<arbitrary>], iteration_bounds = array<i64: 2, 2>, scalar_prefetch = 0 : i64, scratch_operands = 2 : i64, tpu.core_type = #tpu.core_type<tc>, window_params = [{transform_indices = @transform_0, window_bounds = array<i64: 1, 8, 128>}, {pipeline_mode = #tpu.pipeline_mode<synchronous>, transform_indices = @transform_1, window_bounds = array<i64: 384, 128>}, {pipeline_mode = #tpu.pipeline_mode<synchronous>, transform_indices = @transform_2, window_bounds = array<i64: 1, 128>}, {pipeline_mode = #tpu.pipeline_mode<synchronous>, transform_indices = @transform_3, window_bounds = array<i64: 384, 128>}, {pipeline_mode = #tpu.pipeline_mode<synchronous>, transform_indices = @transform_4, window_bounds = array<i64: 1, 128>}, {pipeline_mode = #tpu.pipeline_mode<synchronous>, transform_indices = @transform_5, window_bounds = array<i64: 128, 128>}, {pipeline_mode = #tpu.pipeline_mode<synchronous>, transform_indices = @transform_6, window_bounds = array<i64: 1, 128>}, {transform_indices = @transform_7, window_bounds = array<i64: 1, 8, 128>}]} {
    %c0_i32 = arith.constant 0 : i32
    %0 = arith.cmpi eq, %arg1, %c0_i32 : i32
    %1 = arith.extui %0 : i1 to i32
    %c0_i32_0 = arith.constant 0 : i32
    %2 = arith.cmpi ne, %1, %c0_i32_0 : i32
    scf.if %2 {
      %cst_50 = arith.constant 0.000000e+00 : f32
      %54 = vector.broadcast %cst_50 : f32 to vector<8x128xf32>
      %c0_51 = arith.constant 0 : index
      %c0_52 = arith.constant 0 : index
      %55 = vector.load %arg10[%c0_51, %c0_52] : memref<16x128xf32, #tpu.memory_space<vmem>>, vector<8x128xf32>
      tpu.vector_store %arg10[%c0_51, %c0_52], %54 {strides = array<i32>} : memref<16x128xf32, #tpu.memory_space<vmem>>, vector<8x128xf32>,
      %cst_53 = arith.constant 0.000000e+00 : f32
      %56 = vector.broadcast %cst_53 : f32 to vector<8x128xf32>
      %c0_54 = arith.constant 0 : index
      %c0_55 = arith.constant 0 : index
      %57 = vector.load %arg11[%c0_54, %c0_55] : memref<16x128xf32, #tpu.memory_space<vmem>>, vector<8x128xf32>
      tpu.vector_store %arg11[%c0_54, %c0_55], %56 {strides = array<i32>} : memref<16x128xf32, #tpu.memory_space<vmem>>, vector<8x128xf32>,
    } else {
    }
    %c0_i32_1 = arith.constant 0 : i32
    %3 = arith.cmpi sgt, %arg1, %c0_i32_1 : i32
    %4 = arith.extui %3 : i1 to i32
    %c0_i32_2 = arith.constant 0 : i32
    %5 = arith.cmpi ne, %4, %c0_i32_2 : i32
    scf.if %5 {
      %c8_50 = arith.constant 8 : index
      %c0_51 = arith.constant 0 : index
      %54 = vector.load %arg10[%c8_50, %c0_51] : memref<16x128xf32, #tpu.memory_space<vmem>>, vector<8x128xf32>
      %c0_52 = arith.constant 0 : index
      %c0_53 = arith.constant 0 : index
      %55 = vector.load %arg10[%c0_52, %c0_53] : memref<16x128xf32, #tpu.memory_space<vmem>>, vector<8x128xf32>
      tpu.vector_store %arg10[%c0_52, %c0_53], %54 {strides = array<i32>} : memref<16x128xf32, #tpu.memory_space<vmem>>, vector<8x128xf32>,
      %c8_54 = arith.constant 8 : index
      %c0_55 = arith.constant 0 : index
      %56 = vector.load %arg11[%c8_54, %c0_55] : memref<16x128xf32, #tpu.memory_space<vmem>>, vector<8x128xf32>
      %c0_56 = arith.constant 0 : index
      %c0_57 = arith.constant 0 : index
      %57 = vector.load %arg11[%c0_56, %c0_57] : memref<16x128xf32, #tpu.memory_space<vmem>>, vector<8x128xf32>
      tpu.vector_store %arg11[%c0_56, %c0_57], %56 {strides = array<i32>} : memref<16x128xf32, #tpu.memory_space<vmem>>, vector<8x128xf32>,
    } else {
    }
    %c0 = arith.constant 0 : index
    %c0_3 = arith.constant 0 : index
    %c0_4 = arith.constant 0 : index
    %6 = vector.load %arg2[%c0, %c0_3, %c0_4] : memref<1x8x128xf32, #tpu.memory_space<vmem>>, vector<1x8x128xf32>
    %7 = vector.shape_cast %6 : vector<1x8x128xf32> to vector<8x128xf32>
    %c8 = arith.constant 8 : index
    %c0_5 = arith.constant 0 : index
    %8 = vector.load %arg10[%c8, %c0_5] : memref<16x128xf32, #tpu.memory_space<vmem>>, vector<8x128xf32>
    tpu.vector_store %arg10[%c8, %c0_5], %7 {strides = array<i32>} : memref<16x128xf32, #tpu.memory_space<vmem>>, vector<8x128xf32>,
    %c4 = arith.constant 4 : index
    %c0_6 = arith.constant 0 : index
    %9 = vector.load %arg10[%c4, %c0_6] : memref<16x128xf32, #tpu.memory_space<vmem>>, vector<8x128xf32>
    %c0_7 = arith.constant 0 : index
    %c0_8 = arith.constant 0 : index
    %10 = vector.load %arg3[%c0_7, %c0_8] : memref<384x128xf32, #tpu.memory_space<vmem>>, vector<128x128xf32>
    %cst = arith.constant dense<0.000000e+00> : vector<8x128xf32>
    %11 = tpu.matmul %9, %10, %cst {dimension_numbers = #tpu.dot_dimension_numbers<[1], [0], [0], [1], [0, 0, 1, 1], [], []>} : vector<8x128xf32>, vector<128x128xf32>, vector<8x128xf32> -> vector<8x128xf32>
    %c6 = arith.constant 6 : index
    %c0_9 = arith.constant 0 : index
    %12 = vector.load %arg10[%c6, %c0_9] : memref<16x128xf32, #tpu.memory_space<vmem>>, vector<8x128xf32>
    %c128 = arith.constant 128 : index
    %c0_10 = arith.constant 0 : index
    %13 = vector.load %arg3[%c128, %c0_10] : memref<384x128xf32, #tpu.memory_space<vmem>>, vector<128x128xf32>
    %cst_11 = arith.constant dense<0.000000e+00> : vector<8x128xf32>
    %14 = tpu.matmul %12, %13, %cst_11 {dimension_numbers = #tpu.dot_dimension_numbers<[1], [0], [0], [1], [0, 0, 1, 1], [], []>} : vector<8x128xf32>, vector<128x128xf32>, vector<8x128xf32> -> vector<8x128xf32>
    %15 = arith.addf %11, %14 : vector<8x128xf32>
    %c8_12 = arith.constant 8 : index
    %c0_13 = arith.constant 0 : index
    %16 = vector.load %arg10[%c8_12, %c0_13] : memref<16x128xf32, #tpu.memory_space<vmem>>, vector<8x128xf32>
    %c256 = arith.constant 256 : index
    %c0_14 = arith.constant 0 : index
    %17 = vector.load %arg3[%c256, %c0_14] : memref<384x128xf32, #tpu.memory_space<vmem>>, vector<128x128xf32>
    %cst_15 = arith.constant dense<0.000000e+00> : vector<8x128xf32>
    %18 = tpu.matmul %16, %17, %cst_15 {dimension_numbers = #tpu.dot_dimension_numbers<[1], [0], [0], [1], [0, 0, 1, 1], [], []>} : vector<8x128xf32>, vector<128x128xf32>, vector<8x128xf32> -> vector<8x128xf32>
    %19 = arith.addf %15, %18 : vector<8x128xf32>
    %c0_16 = arith.constant 0 : index
    %c0_17 = arith.constant 0 : index
    %20 = vector.load %arg4[%c0_16, %c0_17] : memref<1x128xf32, #tpu.memory_space<vmem>>, vector<1x128xf32>
    %21 = vector.broadcast %20 : vector<1x128xf32> to vector<8x128xf32>
    %22 = arith.addf %19, %21 : vector<8x128xf32>
    %cst_18 = arith.constant 0.000000e+00 : f32
    %23 = vector.broadcast %cst_18 : f32 to vector<8x128xf32>
    %24 = arith.maximumf %22, %23 : vector<8x128xf32>
    %c8_19 = arith.constant 8 : index
    %c0_20 = arith.constant 0 : index
    %25 = vector.load %arg11[%c8_19, %c0_20] : memref<16x128xf32, #tpu.memory_space<vmem>>, vector<8x128xf32>
    tpu.vector_store %arg11[%c8_19, %c0_20], %24 {strides = array<i32>} : memref<16x128xf32, #tpu.memory_space<vmem>>, vector<8x128xf32>,
    %c4_21 = arith.constant 4 : index
    %c0_22 = arith.constant 0 : index
    %26 = vector.load %arg11[%c4_21, %c0_22] : memref<16x128xf32, #tpu.memory_space<vmem>>, vector<8x128xf32>
    %c0_23 = arith.constant 0 : index
    %c0_24 = arith.constant 0 : index
    %27 = vector.load %arg5[%c0_23, %c0_24] : memref<384x128xf32, #tpu.memory_space<vmem>>, vector<128x128xf32>
    %cst_25 = arith.constant dense<0.000000e+00> : vector<8x128xf32>
    %28 = tpu.matmul %26, %27, %cst_25 {dimension_numbers = #tpu.dot_dimension_numbers<[1], [0], [0], [1], [0, 0, 1, 1], [], []>} : vector<8x128xf32>, vector<128x128xf32>, vector<8x128xf32> -> vector<8x128xf32>
    %c6_26 = arith.constant 6 : index
    %c0_27 = arith.constant 0 : index
    %29 = vector.load %arg11[%c6_26, %c0_27] : memref<16x128xf32, #tpu.memory_space<vmem>>, vector<8x128xf32>
    %c128_28 = arith.constant 128 : index
    %c0_29 = arith.constant 0 : index
    %30 = vector.load %arg5[%c128_28, %c0_29] : memref<384x128xf32, #tpu.memory_space<vmem>>, vector<128x128xf32>
    %cst_30 = arith.constant dense<0.000000e+00> : vector<8x128xf32>
    %31 = tpu.matmul %29, %30, %cst_30 {dimension_numbers = #tpu.dot_dimension_numbers<[1], [0], [0], [1], [0, 0, 1, 1], [], []>} : vector<8x128xf32>, vector<128x128xf32>, vector<8x128xf32> -> vector<8x128xf32>
    %32 = arith.addf %28, %31 : vector<8x128xf32>
    %c8_31 = arith.constant 8 : index
    %c0_32 = arith.constant 0 : index
    %33 = vector.load %arg11[%c8_31, %c0_32] : memref<16x128xf32, #tpu.memory_space<vmem>>, vector<8x128xf32>
    %c256_33 = arith.constant 256 : index
    %c0_34 = arith.constant 0 : index
    %34 = vector.load %arg5[%c256_33, %c0_34] : memref<384x128xf32, #tpu.memory_space<vmem>>, vector<128x128xf32>
    %cst_35 = arith.constant dense<0.000000e+00> : vector<8x128xf32>
    %35 = tpu.matmul %33, %34, %cst_35 {dimension_numbers = #tpu.dot_dimension_numbers<[1], [0], [0], [1], [0, 0, 1, 1], [], []>} : vector<8x128xf32>, vector<128x128xf32>, vector<8x128xf32> -> vector<8x128xf32>
    %36 = arith.addf %32, %35 : vector<8x128xf32>
    %c0_36 = arith.constant 0 : index
    %c0_37 = arith.constant 0 : index
    %37 = vector.load %arg6[%c0_36, %c0_37] : memref<1x128xf32, #tpu.memory_space<vmem>>, vector<1x128xf32>
    %38 = vector.broadcast %37 : vector<1x128xf32> to vector<8x128xf32>
    %39 = arith.addf %36, %38 : vector<8x128xf32>
    %cst_38 = arith.constant 0.000000e+00 : f32
    %40 = vector.broadcast %cst_38 : f32 to vector<8x128xf32>
    %41 = arith.maximumf %39, %40 : vector<8x128xf32>
    %c8_39 = arith.constant 8 : index
    %c0_40 = arith.constant 0 : index
    %42 = vector.load %arg10[%c8_39, %c0_40] : memref<16x128xf32, #tpu.memory_space<vmem>>, vector<8x128xf32>
    %c0_41 = arith.constant 0 : index
    %c0_42 = arith.constant 0 : index
    %43 = vector.load %arg7[%c0_41, %c0_42] : memref<128x128xf32, #tpu.memory_space<vmem>>, vector<128x128xf32>
    %cst_43 = arith.constant dense<0.000000e+00> : vector<8x128xf32>
    %44 = tpu.matmul %42, %43, %cst_43 {dimension_numbers = #tpu.dot_dimension_numbers<[1], [0], [0], [1], [0, 0, 1, 1], [], []>} : vector<8x128xf32>, vector<128x128xf32>, vector<8x128xf32> -> vector<8x128xf32>
    %c0_44 = arith.constant 0 : index
    %c0_45 = arith.constant 0 : index
    %45 = vector.load %arg8[%c0_44, %c0_45] : memref<1x128xf32, #tpu.memory_space<vmem>>, vector<1x128xf32>
    %46 = vector.broadcast %45 : vector<1x128xf32> to vector<8x128xf32>
    %47 = arith.addf %44, %46 : vector<8x128xf32>
    %48 = arith.addf %41, %47 : vector<8x128xf32>
    %cst_46 = arith.constant 0.000000e+00 : f32
    %49 = vector.broadcast %cst_46 : f32 to vector<8x128xf32>
    %50 = arith.maximumf %48, %49 : vector<8x128xf32>
    %c0_47 = arith.constant 0 : index
    %c0_48 = arith.constant 0 : index
    %c0_49 = arith.constant 0 : index
    %51 = vector.load %arg9[%c0_47, %c0_48, %c0_49] : memref<1x8x128xf32, #tpu.memory_space<vmem>>, vector<1x8x128xf32>
    %52 = vector.shape_cast %51 : vector<1x8x128xf32> to vector<8x128xf32>
    %53 = vector.shape_cast %50 : vector<8x128xf32> to vector<1x8x128xf32>
    tpu.vector_store %arg9[%c0_47, %c0_48, %c0_49], %53 {strides = array<i32>} : memref<1x8x128xf32, #tpu.memory_space<vmem>>, vector<1x8x128xf32>,
    return
  }
  func.func @transform_0(%arg0: i32, %arg1: i32) -> (i32, i32, i32) {
    %c0_i32 = arith.constant 0 : i32
    %c0_i32_0 = arith.constant 0 : i32
    return %arg0, %arg1, %c0_i32 : i32, i32, i32
  }
  func.func @transform_1(%arg0: i32, %arg1: i32) -> (i32, i32) {
    %c0_i32 = arith.constant 0 : i32
    %c0_i32_0 = arith.constant 0 : i32
    %c0_i32_1 = arith.constant 0 : i32
    return %c0_i32, %c0_i32_0 : i32, i32
  }
  func.func @transform_2(%arg0: i32, %arg1: i32) -> (i32, i32) {
    %c0_i32 = arith.constant 0 : i32
    %c0_i32_0 = arith.constant 0 : i32
    %c0_i32_1 = arith.constant 0 : i32
    return %c0_i32, %c0_i32_0 : i32, i32
  }
  func.func @transform_3(%arg0: i32, %arg1: i32) -> (i32, i32) {
    %c0_i32 = arith.constant 0 : i32
    %c0_i32_0 = arith.constant 0 : i32
    %c0_i32_1 = arith.constant 0 : i32
    return %c0_i32, %c0_i32_0 : i32, i32
  }
  func.func @transform_4(%arg0: i32, %arg1: i32) -> (i32, i32) {
    %c0_i32 = arith.constant 0 : i32
    %c0_i32_0 = arith.constant 0 : i32
    %c0_i32_1 = arith.constant 0 : i32
    return %c0_i32, %c0_i32_0 : i32, i32
  }
  func.func @transform_5(%arg0: i32, %arg1: i32) -> (i32, i32) {
    %c0_i32 = arith.constant 0 : i32
    %c0_i32_0 = arith.constant 0 : i32
    %c0_i32_1 = arith.constant 0 : i32
    return %c0_i32, %c0_i32_0 : i32, i32
  }
  func.func @transform_6(%arg0: i32, %arg1: i32) -> (i32, i32) {
    %c0_i32 = arith.constant 0 : i32
    %c0_i32_0 = arith.constant 0 : i32
    %c0_i32_1 = arith.constant 0 : i32
    return %c0_i32, %c0_i32_0 : i32, i32
  }
  func.func @transform_7(%arg0: i32, %arg1: i32) -> (i32, i32, i32) {
    %c0_i32 = arith.constant 0 : i32
    %c0_i32_0 = arith.constant 0 : i32
    return %arg0, %arg1, %c0_i32 : i32, i32, i32
  }
}

module attributes {stable_mosaic.version = 11 : i64} {
  func.func @_temporal_block_kernel(%arg0: i32, %arg1: i32, %arg2: memref<1x8x128xf32, #tpu.memory_space<vmem>>, %arg3: memref<384x128xf32, #tpu.memory_space<vmem>>, %arg4: memref<1x128xf32, #tpu.memory_space<vmem>>, %arg5: memref<384x128xf32, #tpu.memory_space<vmem>>, %arg6: memref<1x128xf32, #tpu.memory_space<vmem>>, %arg7: memref<128x128xf32, #tpu.memory_space<vmem>>, %arg8: memref<1x128xf32, #tpu.memory_space<vmem>>, %arg9: memref<1x8x128xf32, #tpu.memory_space<vmem>>, %arg10: memref<16x128xf32, #tpu.memory_space<vmem>>, %arg11: memref<16x128xf32, #tpu.memory_space<vmem>>) attributes {dimension_semantics = [#tpu.dimension_semantics<parallel>, #tpu.dimension_semantics<arbitrary>], iteration_bounds = array<i64: 2, 2>, scalar_prefetch = 0 : i64, scratch_operands = 2 : i64, tpu.core_type = #tpu.core_type<tc>, window_params = [{transform_indices = @transform_0, window_bounds = array<i64: 1, 8, 128>}, {pipeline_mode = #tpu.pipeline_mode<synchronous>, transform_indices = @transform_1, window_bounds = array<i64: 384, 128>}, {pipeline_mode = #tpu.pipeline_mode<synchronous>, transform_indices = @transform_2, window_bounds = array<i64: 1, 128>}, {pipeline_mode = #tpu.pipeline_mode<synchronous>, transform_indices = @transform_3, window_bounds = array<i64: 384, 128>}, {pipeline_mode = #tpu.pipeline_mode<synchronous>, transform_indices = @transform_4, window_bounds = array<i64: 1, 128>}, {pipeline_mode = #tpu.pipeline_mode<synchronous>, transform_indices = @transform_5, window_bounds = array<i64: 128, 128>}, {pipeline_mode = #tpu.pipeline_mode<synchronous>, transform_indices = @transform_6, window_bounds = array<i64: 1, 128>}, {transform_indices = @transform_7, window_bounds = array<i64: 1, 8, 128>}]} {
    %c0_i32 = arith.constant 0 : i32
    %0 = arith.cmpi eq, %arg1, %c0_i32 : i32
    %1 = arith.extui %0 : i1 to i32
    %c0_i32_0 = arith.constant 0 : i32
    %2 = arith.cmpi ne, %1, %c0_i32_0 : i32
    scf.if %2 {
      %cst_50 = arith.constant 0.000000e+00 : f32
      %54 = vector.broadcast %cst_50 : f32 to vector<8x128xf32>
      %c0_51 = arith.constant 0 : index
      %c0_52 = arith.constant 0 : index
      %55 = vector.load %arg10[%c0_51, %c0_52] : memref<16x128xf32, #tpu.memory_space<vmem>>, vector<8x128xf32>
      tpu.vector_store %arg10[%c0_51, %c0_52], %54 {strides = array<i32>} : memref<16x128xf32, #tpu.memory_space<vmem>>, vector<8x128xf32>,
      %cst_53 = arith.constant 0.000000e+00 : f32
      %56 = vector.broadcast %cst_53 : f32 to vector<8x128xf32>
      %c0_54 = arith.constant 0 : index
      %c0_55 = arith.constant 0 : index
      %57 = vector.load %arg11[%c0_54, %c0_55] : memref<16x128xf32, #tpu.memory_space<vmem>>, vector<8x128xf32>
      tpu.vector_store %arg11[%c0_54, %c0_55], %56 {strides = array<i32>} : memref<16x128xf32, #tpu.memory_space<vmem>>, vector<8x128xf32>,
    } else {
    }
    %c0_i32_1 = arith.constant 0 : i32
    %3 = arith.cmpi sgt, %arg1, %c0_i32_1 : i32
    %4 = arith.extui %3 : i1 to i32
    %c0_i32_2 = arith.constant 0 : i32
    %5 = arith.cmpi ne, %4, %c0_i32_2 : i32
    scf.if %5 {
      %c8_50 = arith.constant 8 : index
      %c0_51 = arith.constant 0 : index
      %54 = vector.load %arg10[%c8_50, %c0_51] : memref<16x128xf32, #tpu.memory_space<vmem>>, vector<8x128xf32>
      %c0_52 = arith.constant 0 : index
      %c0_53 = arith.constant 0 : index
      %55 = vector.load %arg10[%c0_52, %c0_53] : memref<16x128xf32, #tpu.memory_space<vmem>>, vector<8x128xf32>
      tpu.vector_store %arg10[%c0_52, %c0_53], %54 {strides = array<i32>} : memref<16x128xf32, #tpu.memory_space<vmem>>, vector<8x128xf32>,
      %c8_54 = arith.constant 8 : index
      %c0_55 = arith.constant 0 : index
      %56 = vector.load %arg11[%c8_54, %c0_55] : memref<16x128xf32, #tpu.memory_space<vmem>>, vector<8x128xf32>
      %c0_56 = arith.constant 0 : index
      %c0_57 = arith.constant 0 : index
      %57 = vector.load %arg11[%c0_56, %c0_57] : memref<16x128xf32, #tpu.memory_space<vmem>>, vector<8x128xf32>
      tpu.vector_store %arg11[%c0_56, %c0_57], %56 {strides = array<i32>} : memref<16x128xf32, #tpu.memory_space<vmem>>, vector<8x128xf32>,
    } else {
    }
    %c0 = arith.constant 0 : index
    %c0_3 = arith.constant 0 : index
    %c0_4 = arith.constant 0 : index
    %6 = vector.load %arg2[%c0, %c0_3, %c0_4] : memref<1x8x128xf32, #tpu.memory_space<vmem>>, vector<1x8x128xf32>
    %7 = vector.shape_cast %6 : vector<1x8x128xf32> to vector<8x128xf32>
    %c8 = arith.constant 8 : index
    %c0_5 = arith.constant 0 : index
    %8 = vector.load %arg10[%c8, %c0_5] : memref<16x128xf32, #tpu.memory_space<vmem>>, vector<8x128xf32>
    tpu.vector_store %arg10[%c8, %c0_5], %7 {strides = array<i32>} : memref<16x128xf32, #tpu.memory_space<vmem>>, vector<8x128xf32>,
    %c4 = arith.constant 4 : index
    %c0_6 = arith.constant 0 : index
    %9 = vector.load %arg10[%c4, %c0_6] : memref<16x128xf32, #tpu.memory_space<vmem>>, vector<8x128xf32>
    %c0_7 = arith.constant 0 : index
    %c0_8 = arith.constant 0 : index
    %10 = vector.load %arg3[%c0_7, %c0_8] : memref<384x128xf32, #tpu.memory_space<vmem>>, vector<128x128xf32>
    %cst = arith.constant dense<0.000000e+00> : vector<8x128xf32>
    %11 = tpu.matmul %9, %10, %cst {dimension_numbers = #tpu.dot_dimension_numbers<[1], [0], [0], [1], [0, 0, 1, 1], [], []>} : vector<8x128xf32>, vector<128x128xf32>, vector<8x128xf32> -> vector<8x128xf32>
    %c6 = arith.constant 6 : index
    %c0_9 = arith.constant 0 : index
    %12 = vector.load %arg10[%c6, %c0_9] : memref<16x128xf32, #tpu.memory_space<vmem>>, vector<8x128xf32>
    %c128 = arith.constant 128 : index
    %c0_10 = arith.constant 0 : index
    %13 = vector.load %arg3[%c128, %c0_10] : memref<384x128xf32, #tpu.memory_space<vmem>>, vector<128x128xf32>
    %cst_11 = arith.constant dense<0.000000e+00> : vector<8x128xf32>
    %14 = tpu.matmul %12, %13, %cst_11 {dimension_numbers = #tpu.dot_dimension_numbers<[1], [0], [0], [1], [0, 0, 1, 1], [], []>} : vector<8x128xf32>, vector<128x128xf32>, vector<8x128xf32> -> vector<8x128xf32>
    %15 = arith.addf %11, %14 : vector<8x128xf32>
    %c8_12 = arith.constant 8 : index
    %c0_13 = arith.constant 0 : index
    %16 = vector.load %arg10[%c8_12, %c0_13] : memref<16x128xf32, #tpu.memory_space<vmem>>, vector<8x128xf32>
    %c256 = arith.constant 256 : index
    %c0_14 = arith.constant 0 : index
    %17 = vector.load %arg3[%c256, %c0_14] : memref<384x128xf32, #tpu.memory_space<vmem>>, vector<128x128xf32>
    %cst_15 = arith.constant dense<0.000000e+00> : vector<8x128xf32>
    %18 = tpu.matmul %16, %17, %cst_15 {dimension_numbers = #tpu.dot_dimension_numbers<[1], [0], [0], [1], [0, 0, 1, 1], [], []>} : vector<8x128xf32>, vector<128x128xf32>, vector<8x128xf32> -> vector<8x128xf32>
    %19 = arith.addf %15, %18 : vector<8x128xf32>
    %c0_16 = arith.constant 0 : index
    %c0_17 = arith.constant 0 : index
    %20 = vector.load %arg4[%c0_16, %c0_17] : memref<1x128xf32, #tpu.memory_space<vmem>>, vector<1x128xf32>
    %21 = vector.broadcast %20 : vector<1x128xf32> to vector<8x128xf32>
    %22 = arith.addf %19, %21 : vector<8x128xf32>
    %cst_18 = arith.constant 0.000000e+00 : f32
    %23 = vector.broadcast %cst_18 : f32 to vector<8x128xf32>
    %24 = arith.maximumf %22, %23 : vector<8x128xf32>
    %c8_19 = arith.constant 8 : index
    %c0_20 = arith.constant 0 : index
    %25 = vector.load %arg11[%c8_19, %c0_20] : memref<16x128xf32, #tpu.memory_space<vmem>>, vector<8x128xf32>
    tpu.vector_store %arg11[%c8_19, %c0_20], %24 {strides = array<i32>} : memref<16x128xf32, #tpu.memory_space<vmem>>, vector<8x128xf32>,
    %c4_21 = arith.constant 4 : index
    %c0_22 = arith.constant 0 : index
    %26 = vector.load %arg11[%c4_21, %c0_22] : memref<16x128xf32, #tpu.memory_space<vmem>>, vector<8x128xf32>
    %c0_23 = arith.constant 0 : index
    %c0_24 = arith.constant 0 : index
    %27 = vector.load %arg5[%c0_23, %c0_24] : memref<384x128xf32, #tpu.memory_space<vmem>>, vector<128x128xf32>
    %cst_25 = arith.constant dense<0.000000e+00> : vector<8x128xf32>
    %28 = tpu.matmul %26, %27, %cst_25 {dimension_numbers = #tpu.dot_dimension_numbers<[1], [0], [0], [1], [0, 0, 1, 1], [], []>} : vector<8x128xf32>, vector<128x128xf32>, vector<8x128xf32> -> vector<8x128xf32>
    %c6_26 = arith.constant 6 : index
    %c0_27 = arith.constant 0 : index
    %29 = vector.load %arg11[%c6_26, %c0_27] : memref<16x128xf32, #tpu.memory_space<vmem>>, vector<8x128xf32>
    %c128_28 = arith.constant 128 : index
    %c0_29 = arith.constant 0 : index
    %30 = vector.load %arg5[%c128_28, %c0_29] : memref<384x128xf32, #tpu.memory_space<vmem>>, vector<128x128xf32>
    %cst_30 = arith.constant dense<0.000000e+00> : vector<8x128xf32>
    %31 = tpu.matmul %29, %30, %cst_30 {dimension_numbers = #tpu.dot_dimension_numbers<[1], [0], [0], [1], [0, 0, 1, 1], [], []>} : vector<8x128xf32>, vector<128x128xf32>, vector<8x128xf32> -> vector<8x128xf32>
    %32 = arith.addf %28, %31 : vector<8x128xf32>
    %c8_31 = arith.constant 8 : index
    %c0_32 = arith.constant 0 : index
    %33 = vector.load %arg11[%c8_31, %c0_32] : memref<16x128xf32, #tpu.memory_space<vmem>>, vector<8x128xf32>
    %c256_33 = arith.constant 256 : index
    %c0_34 = arith.constant 0 : index
    %34 = vector.load %arg5[%c256_33, %c0_34] : memref<384x128xf32, #tpu.memory_space<vmem>>, vector<128x128xf32>
    %cst_35 = arith.constant dense<0.000000e+00> : vector<8x128xf32>
    %35 = tpu.matmul %33, %34, %cst_35 {dimension_numbers = #tpu.dot_dimension_numbers<[1], [0], [0], [1], [0, 0, 1, 1], [], []>} : vector<8x128xf32>, vector<128x128xf32>, vector<8x128xf32> -> vector<8x128xf32>
    %36 = arith.addf %32, %35 : vector<8x128xf32>
    %c0_36 = arith.constant 0 : index
    %c0_37 = arith.constant 0 : index
    %37 = vector.load %arg6[%c0_36, %c0_37] : memref<1x128xf32, #tpu.memory_space<vmem>>, vector<1x128xf32>
    %38 = vector.broadcast %37 : vector<1x128xf32> to vector<8x128xf32>
    %39 = arith.addf %36, %38 : vector<8x128xf32>
    %cst_38 = arith.constant 0.000000e+00 : f32
    %40 = vector.broadcast %cst_38 : f32 to vector<8x128xf32>
    %41 = arith.maximumf %39, %40 : vector<8x128xf32>
    %c8_39 = arith.constant 8 : index
    %c0_40 = arith.constant 0 : index
    %42 = vector.load %arg10[%c8_39, %c0_40] : memref<16x128xf32, #tpu.memory_space<vmem>>, vector<8x128xf32>
    %c0_41 = arith.constant 0 : index
    %c0_42 = arith.constant 0 : index
    %43 = vector.load %arg7[%c0_41, %c0_42] : memref<128x128xf32, #tpu.memory_space<vmem>>, vector<128x128xf32>
    %cst_43 = arith.constant dense<0.000000e+00> : vector<8x128xf32>
    %44 = tpu.matmul %42, %43, %cst_43 {dimension_numbers = #tpu.dot_dimension_numbers<[1], [0], [0], [1], [0, 0, 1, 1], [], []>} : vector<8x128xf32>, vector<128x128xf32>, vector<8x128xf32> -> vector<8x128xf32>
    %c0_44 = arith.constant 0 : index
    %c0_45 = arith.constant 0 : index
    %45 = vector.load %arg8[%c0_44, %c0_45] : memref<1x128xf32, #tpu.memory_space<vmem>>, vector<1x128xf32>
    %46 = vector.broadcast %45 : vector<1x128xf32> to vector<8x128xf32>
    %47 = arith.addf %44, %46 : vector<8x128xf32>
    %48 = arith.addf %41, %47 : vector<8x128xf32>
    %cst_46 = arith.constant 0.000000e+00 : f32
    %49 = vector.broadcast %cst_46 : f32 to vector<8x128xf32>
    %50 = arith.maximumf %48, %49 : vector<8x128xf32>
    %c0_47 = arith.constant 0 : index
    %c0_48 = arith.constant 0 : index
    %c0_49 = arith.constant 0 : index
    %51 = vector.load %arg9[%c0_47, %c0_48, %c0_49] : memref<1x8x128xf32, #tpu.memory_space<vmem>>, vector<1x8x128xf32>
    %52 = vector.shape_cast %51 : vector<1x8x128xf32> to vector<8x128xf32>
    %53 = vector.shape_cast %50 : vector<8x128xf32> to vector<1x8x128xf32>
    tpu.vector_store %arg9[%c0_47, %c0_48, %c0_49], %53 {strides = array<i32>} : memref<1x8x128xf32, #tpu.memory_space<vmem>>, vector<1x8x128xf32>,
    return
  }
  func.func @transform_0(%arg0: i32, %arg1: i32) -> (i32, i32, i32) {
    %c0_i32 = arith.constant 0 : i32
    %c0_i32_0 = arith.constant 0 : i32
    return %arg0, %arg1, %c0_i32 : i32, i32, i32
  }
  func.func @transform_1(%arg0: i32, %arg1: i32) -> (i32, i32) {
    %c0_i32 = arith.constant 0 : i32
    %c0_i32_0 = arith.constant 0 : i32
    %c0_i32_1 = arith.constant 0 : i32
    return %c0_i32, %c0_i32_0 : i32, i32
  }
  func.func @transform_2(%arg0: i32, %arg1: i32) -> (i32, i32) {
    %c0_i32 = arith.constant 0 : i32
    %c0_i32_0 = arith.constant 0 : i32
    %c0_i32_1 = arith.constant 0 : i32
    return %c0_i32, %c0_i32_0 : i32, i32
  }
  func.func @transform_3(%arg0: i32, %arg1: i32) -> (i32, i32) {
    %c0_i32 = arith.constant 0 : i32
    %c0_i32_0 = arith.constant 0 : i32
    %c0_i32_1 = arith.constant 0 : i32
    return %c0_i32, %c0_i32_0 : i32, i32
  }
  func.func @transform_4(%arg0: i32, %arg1: i32) -> (i32, i32) {
    %c0_i32 = arith.constant 0 : i32
    %c0_i32_0 = arith.constant 0 : i32
    %c0_i32_1 = arith.constant 0 : i32
    return %c0_i32, %c0_i32_0 : i32, i32
  }
  func.func @transform_5(%arg0: i32, %arg1: i32) -> (i32, i32) {
    %c0_i32 = arith.constant 0 : i32
    %c0_i32_0 = arith.constant 0 : i32
    %c0_i32_1 = arith.constant 0 : i32
    return %c0_i32, %c0_i32_0 : i32, i32
  }
  func.func @transform_6(%arg0: i32, %arg1: i32) -> (i32, i32) {
    %c0_i32 = arith.constant 0 : i32
    %c0_i32_0 = arith.constant 0 : i32
    %c0_i32_1 = arith.constant 0 : i32
    return %c0_i32, %c0_i32_0 : i32, i32
  }
  func.func @transform_7(%arg0: i32, %arg1: i32) -> (i32, i32, i32) {
    %c0_i32 = arith.constant 0 : i32
    %c0_i32_0 = arith.constant 0 : i32
    return %arg0, %arg1, %c0_i32 : i32, i32, i32
  }
}

</mosaic_0001>

<bundles_post_ra>
// kernel: tpu_custom_call.1
= control target key start
LH: loop header
LB: loop body
LE: loop exit
PB: predicated region body
PF: predicated region fallthrough
CT: control target
= control target key end

     0   :  { %s2278_s0 = inlined_call_operand.hbm [shape: f32[2,16,128], index: 0, kind: input, shape index: {}]   ;;  %s2279_s1 = inlined_call_operand.hbm [shape: f32[384,128], index: 1, kind: input, shape index: {}]   ;;  %s2280_s2 = inlined_call_operand.vmem [shape: f32[1,128], index: 2, kind: input, shape index: {}]   ;;  %s2281_s3 = inlined_call_operand.hbm [shape: f32[384,128], index: 3, kind: input, shape index: {}]   ;;  %s2282_s4 = inlined_call_operand.vmem [shape: f32[1,128], index: 4, kind: input, shape index: {}]   ;;  %s2283_s5 = inlined_call_operand.hbm [shape: f32[128,128], index: 5, kind: input, shape index: {}]   ;;  %s2284_s6 = inlined_call_operand.vmem [shape: f32[1,128], index: 6, kind: input, shape index: {}]   ;;  %s2285_s7 = inlined_call_operand.hbm [shape: f32[2,16,128], index: 7, kind: output, shape index: {}]  }
   0x1   :  { %2296 = sst [smem:[#allocation21_spill]] %s2279_s1 }
   0x2   :  { %2297 = sst [smem:[#allocation22_spill]] %s2281_s3 }
   0x3   :  { %2298 = sst [smem:[#allocation23_spill]] %s2283_s5 }
   0x4   :  { %2299 = sst [smem:[#allocation24_spill]] %s2284_s6 }
   0x5   :  { %2300 = sst [smem:[#allocation25_spill]] %s2285_s7 }
   0x6   :  { %12 = vsyncpa [#allocation5], 0 }
   0x7   :  { %14 = vsyncpa [#allocation5 + $0x1], 0 }
   0x8   :  { %15 = vsyncpa [#allocation8], 0 }
   0x9   :  { %16 = vsyncpa [#allocation11], 0 }
   0xa   :  { %17 = vsyncpa [#allocation6], 0 }
   0xb   :  { %19 = vsyncpa [#allocation6 + $0x1], 0  ;;  %s1908_s24 = smov 0   ;;  %s1910_s25 = smov 0  }
   0xc   :  { %s1912_s26 = smov 0   ;;  %s1914_s27 = smov 0  }
   0xd   :  { %s1916_s28 = smov 0   ;;  %s1918_s29 = smov 0  }
   0xe   :  { %s1920_s30 = smov 0   ;;  %s1922_s8 = smov 0  }
   0xf LB: > { %2301 = sst [smem:[#allocation17_spill]] %s1828_s24  ;;  %s1142_s9 = sadd.s32 4294967295, %s1856_s8   ;;  %s1856_s8 = sphi %s1922_s8, %s25_s8   ;;  %s1852_s30 = sphi %s1920_s30, %s2334_s30   ;;  %s1848_s29 = sphi %s1918_s29, %s2333_s29   ;;  %s1844_s28 = sphi %s1916_s28, %s2332_s28   ;;  %s1840_s27 = sphi %s1914_s27, %s2331_s27   ;;  %s1836_s26 = sphi %s1912_s26, %s2330_s26   ;;  %s1832_s25 = sphi %s1910_s25, %s2329_s25   ;;  %s1828_s24 = sphi %s1908_s24, %s2328_s24  }
  0x10   : > { %s1143_s10 = sadd.s32 4294967294, %s1856_s8   ;;  %p59_p0 = scmp.ne.s32.totalorder %s1832_s25, %s1828_s24 }
  0x11   : > { %p1952_p1 = scmp.eq.s32.totalorder %s1142_s9, 0  ;;  %p1956_p2 = scmp.eq.s32.totalorder %s1142_s9, 3 }
  0x12   : > { %p217_p3 = scmp.eq.s32.totalorder %s1143_s10, 3  ;;  %p1144_p5 = scmp.ge.s32.totalorder %s1856_s8, 1 }
  0x13   : > { %s2302_s11 = scalar_select %p1952_p1, 1, 0 }
  0x14   : > { %p1962_p4 = por %p1952_p1, %p59_p0  ;;  %p1967_p6 = por %p217_p3, %p59_p0 }
  0x15   : > { %p224_p7 = scmp.lt.s32.totalorder %s1856_s8, 5  ;;  %s1858_s16 = smov [#allocation7]  }
  0x16   : > { %s2304_s13 = scalar_select %p1962_p4, 1, 0 }
  0x17   : > { %s2305_s14 = scalar_select %p1967_p6, 1, 0 }
  0x18   : > { %p1972_p8 = pnand %p1144_p5, %p224_p7  ;;  %s236_s17 = sshll.u32 %s1858_s16, 4  ;;  %s237_s17 = int_to_ptr.vmem [resolvable:$true] %s236_s17 }
  0x19   : > { %2306 = sst [smem:[#allocation18_spill]] %s2305_s14  ;;  %s1859_s19 = smov [#allocation9]  }
  0x1a   : > { %s2307_s15 = scalar_select %p1972_p8, 1, 0 }
  0x1b   : > { %p1548_p9 = pneg %p1972_p8  ;;  %s252_s20 = sshll.u32 %s1859_s19, 4  ;;  %s253_s20 = int_to_ptr.vmem [resolvable:$true] %s252_s20 }
  0x1c   : > { %s1860_s21 = smov [#allocation10]   ;;  %s1657_s23 = scalar_lea.vmem %s237_s17, 6144 }
  0x1d   : > { %p1980_p10 = pnand %p1548_p9, %p1952_p1  ;;  %s268_s22 = sshll.u32 %s1860_s21, 4  ;;  %s269_s22 = int_to_ptr.vmem [resolvable:$true] %s268_s22 }
  0x1e   : > { %p1658_p12 = scmp.ne.s32.totalorder %s237_s17, %s1657_s23  ;;  %p1665_p3 = scmp.lt.s32.totalorder %s237_s17, %s237_s17 }
  0x1f   : > { %p1648_p11 = pneg %p1980_p10  ;;  %p1666_p5 = scmp.lt.s32.totalorder %s1657_s23, %s1657_s23 }
  0x21   : > { %p1660_p13 = pnand %p1658_p12, %p1648_p11  ;;  %p1667_p7 = por %p1666_p5, %p1665_p3 }
  0x23   : > { %p1661_p0 = pneg %p1660_p13 }
  0x25   : > { %p1668_p9 = pnand %p1667_p7, %p1661_p0 }
  0x27   : > { %1671 = shalt.err (!%p1668_p9)
}
  0x28   : > { %s1861_s9 = smov 128   ;;  %s1862_s10 = smov 8  }
  0x29   : > { %s2309_s1 = sld [smem:[#allocation21_spill]]  ;;  %s1683_s21 = scalar_lea.vmem %s253_s20, 6144 }
  0x2a   : > { %p1684_p6 = scmp.ne.s32.totalorder %s253_s20, %s1683_s21  ;;  %p1691_p1 = scmp.lt.s32.totalorder %s253_s20, %s253_s20 }
  0x2b   : > { %p1692_p4 = scmp.lt.s32.totalorder %s1683_s21, %s1683_s21 }
  0x2c   : > { %p1686_p12 = pnand %p1684_p6, %p1648_p11 }
  0x2d   : > { %p1693_p3 = por %p1692_p4, %p1691_p1 }
  0x2e   : > { %p1687_p13 = pneg %p1686_p12 }
  0x2f   : > { %1551 = dma.hbm_to_vmem [thread:$0]  (!%p1980_p10), %s2309_s1, 6144, %s237_s17, [#allocation8], %s1861_s9, %s1861_s9, %s1862_s10  }
  0x30   : > { %p1694_p0 = pnand %p1693_p3, %p1687_p13 }
  0x32   : > { %1697 = shalt.err (!%p1694_p0)
}
  0x33   : > { %s2310_s3 = sld [smem:[#allocation22_spill]]  ;;  %s1709_s17 = scalar_lea.vmem %s269_s22, 2048 }
  0x34   : > { %p1710_p5 = scmp.ne.s32.totalorder %s269_s22, %s1709_s17  ;;  %p1717_p9 = scmp.lt.s32.totalorder %s269_s22, %s269_s22 }
  0x35   : > { %p1718_p12 = scmp.lt.s32.totalorder %s1709_s17, %s1709_s17 }
  0x36   : > { %p1712_p7 = pnand %p1710_p5, %p1648_p11 }
  0x37   : > { %p1719_p8 = por %p1718_p12, %p1717_p9 }
  0x38   : > { %p1713_p6 = pneg %p1712_p7 }
  0x39   : > { %1554 = dma.hbm_to_vmem [thread:$0]  (!%p1980_p10), %s2310_s3, 6144, %s253_s20, [#allocation8], %s1861_s9, %s1861_s9, %s1862_s10  }
  0x3a   : > { %p1720_p1 = pnand %p1719_p8, %p1713_p6 }
  0x3c   : > { %1723 = shalt.err (!%p1720_p1)
}
  0x3d   : > { %s2311_s5 = sld [smem:[#allocation23_spill]]  ;;  %s34_s14 = sadd.s32 1, %s1848_s29 }
  0x3e   : > { %p35_p4 = scmp.ge.s32.totalorder %s34_s14, 2  ;;  %s37_s18 = sadd.s32 1, %s1852_s30 }
  0x3f   : > { %s46_s20 = sadd.s32 1, %s1836_s26  ;;  %p53_p8 = scmp.ne.s32.totalorder %s1836_s26, %s1832_s25 }
  0x40   : > { %s2336_s14 = smov (%p35_p4, %s34_s14), 0  ;;  %s2338_s18 = smov (!%p35_p4, %s37_s18), %s1852_s30 }
  0x41   : > { %2312 = sst [smem:[#allocation19_spill]] %s2336_s14  ;;  %s42_s21 = ssub.s32 %s1848_s29, %s2336_s14 }
  0x42   : > { %p54_p11 = scmp.eq.s32.totalorder %s1856_s8, 0  ;;  %p39_p13 = scmp.ge.s32.totalorder %s2338_s18, 2 }
  0x43   : > { %1557 = dma.hbm_to_vmem [thread:$0]  (!%p1980_p10), %s2311_s5, 2048, %s269_s22, [#allocation11], %s1861_s9, %s1861_s9, %s1862_s10  }
  0x44   : > { %p2023_p3 = por %p1956_p2, %p53_p8  ;;  %p2027_p10 = por %p54_p11, %p53_p8 }
  0x45   : > { %p1569_p0 = scmp.lt.s32.totalorder %s1856_s8, 4  ;;  %s2340_s18 = smov (%p39_p13, %s2338_s18), 0 }
  0x46   : > { %s2313_s23 = scalar_select %p2023_p3, 1, 0 }
  0x47   : > { %s285_s9 = sand.u32 1, %s1836_s26   ;;  %s1150_s10 = sshll.u32 %s1852_s30, 1 }
  0x48   : > { %2314 = sst [smem:[#allocation20_spill]] %s2313_s23  ;;  %s41_s17 = ssub.s32 %s1852_s30, %s2340_s18 }
  0x49   : > { %s43_s16 = sor.u32 %s42_s21, %s41_s17  ;;  %s1149_s19 = sshll.u32 %s285_s9, 3 }
  0x4a   : > { %p44_p5 = scmp.eq.s32.totalorder %s43_s16, 0  ;;  %s294_s12 = sadd.s32 %s1848_s29, %s1150_s10 }
  0x4b   : > { %s289_s1 = scalar_lea.vmem [#allocation4], %s1149_s19  ;;  %s1151_s14 = sshll.u32 %s294_s12, 7 }
  0x4c   : > { %s298_s3 = sshll.u32 %s289_s1, 4  ;;  %s296_s23 = scalar_lea.hbm %s2278_s0, %s1151_s14  ;;  %s299_s3 = int_to_ptr.vmem [resolvable:$true] %s298_s3 }
  0x4d   : > { %s2040_s5 = scalar_select %p44_p5, %s1836_s26, %s46_s20  }
  0x4e   : > { %p2049_p2 = pnand %p1569_p0, %p2027_p10  ;;  %s286_s21 = scalar_lea.sflag [#allocation5], %s285_s9 }
  0x4f   : > { %s1737_s10 = scalar_lea.vmem %s299_s3, 128  ;;  %s1863_s1 = smov [#allocation4]  }
  0x50   : > { %p1726_p7 = pneg %p2049_p2  ;;  %p1738_p6 = scmp.ne.s32.totalorder %s299_s3, %s1737_s10 }
  0x51   : > { %s1742_s20 = sshll.u32 %s1863_s1, 4  ;;  %s1743_s20 = int_to_ptr.vmem [resolvable:$false] %s1742_s20 }
  0x52   : > { %p1740_p9 = pnand %p1738_p6, %p1726_p7  ;;  %s1744_s17 = scalar_lea.vmem %s1743_s20, 256 }
  0x53   : > { %p1745_p1 = scmp.lt.s32.totalorder %s299_s3, %s1743_s20  ;;  %p1746_p4 = scmp.lt.s32.totalorder %s1744_s17, %s1737_s10 }
  0x54   : > { %p1741_p12 = pneg %p1740_p9 }
  0x55   : > { %p1747_p8 = por %p1746_p4, %p1745_p1 }
  0x57   : > { %p1748_p11 = pnand %p1747_p8, %p1741_p12 }
  0x59   : > { %1751 = shalt.err (!%p1748_p11)
}
  0x5a   : > { %1561 = dma.hbm_to_vmem [thread:$0]  (!%p2049_p2), %s296_s23, 128, %s299_s3, %s286_s21  }
  0x5b   : > { %p2317_p13 = scmp.ne.s32.totalorder %s2307_s15, 0 }
  0x5c   : > { %s2060_s7 = sand.u32 (!%p2317_p13), 1, %s1832_s25   ;;  %p2318_p10 = scmp.ne.s32.totalorder (!%p2317_p13), %s2304_s13, 0 }
  0x5d   : > { %307 = sbr.rel (%p2317_p13) target bundleno = 643 (0x283), region = 48  ;;  %s1153_s24 = sshll.u32 (!%p2317_p13), %s2060_s7, 3 }
  0x5e   : > { %s310_s14 = scalar_lea.sflag (!%p2317_p13), [#allocation5], %s2060_s7  ;;  %s2064_s22 = scalar_lea.vmem (!%p2317_p13), [#allocation4], %s1153_s24 }
  0x62   : > { %1811 = dma.done.wait (%p2318_p10), %s310_s14, 128  }
  0x63   : > { %1813 = vsyncadd (%p2318_p10), %s310_s14, 4294967168  ;;  %p2319_p0 = scmp.ne.s32.totalorder %s2302_s11, 0 }
  0x65   : > { %1815 = dma.done.wait (%p2319_p0), [#allocation8], 12288  }
  0x66   : > { %1817 = vsyncadd (%p2319_p0), [#allocation8], 4294955008 }
  0x67   : > { %1819 = dma.done.wait (%p2319_p0), [#allocation11], 2048  }
  0x68   : > { %1821 = vsyncadd (%p2319_p0), [#allocation11], 4294965248  ;;  %s2078_s3 = scalar_lea.vmem [#allocation12], %s1153_s24  ;;  %p1158_p5 = scmp.ne.s32.totalorder %s1840_s27, 0 }
  0x6a   : > { %359 = sbr.rel (%p1158_p5) target bundleno = 113 (0x71), region = 68 }
  0x6f   : > { %v1864_v0 = vmov 0.0  }
  0x70   : > { %360 = vst [vmem:[#allocation2] sm:$0xff] %v1864_v0  ;;  %361 = vst [vmem:[#allocation3] sm:$0xff] %v1864_v0 }
  0x71 PF: > { %p1159_p2 = scmp.le.s32.totalorder %s1840_s27, 0 }
  0x73   : > { %365 = sbr.rel (%p1159_p2) target bundleno = 122 (0x7a), region = 72 }
  0x78   : > { %v366_v1 = vld [vmem:[#allocation2 + $0x8] sm:$0xff]  ;;  %v368_v2 = vld [vmem:[#allocation3 + $0x8] sm:$0xff] }
  0x79   : > { %367 = vst [vmem:[#allocation2] sm:$0xff] %v366_v1  ;;  %369 = vst [vmem:[#allocation3] sm:$0xff] %v368_v2 }
  0x7a PF: > { %v405_v3 = vld [vmem:[#allocation7 + $0xf8] sm:$0xff]  ;;  %v1865_v5 = vmov 0.0   ;;  %v404_v6 = vld [vmem:[#allocation7 + $0xf0] sm:$0xff]  ;;  %v403_v8 = vld [vmem:[#allocation7 + $0xe8] sm:$0xff]  ;;  %vm1866_vm0 = vmmov 0   ;;  %s2320_s16 = sld [smem:[#allocation24_spill]] }
  0x7b   : > { %v388_v4 = vld [vmem:[#allocation7 + $0x78] sm:$0xff]  ;;  %1287 = vmatprep.subr.mxu0 %v1865_v5  ;;  %1322 = vmatprep.subr.mxu1 %v1865_v5  ;;  %v387_v7 = vld [vmem:[#allocation7 + $0x70] sm:$0xff]  ;;  %v386_v9 = vld [vmem:[#allocation7 + $0x68] sm:$0xff]  ;;  %s1164_s19 = sshll.u32 %s1844_s28, 1  ;;  %s1028_s1 = sshll.u32 %s2078_s3, 4  ;;  %s1029_s1 = int_to_ptr.vmem [resolvable:$true] %s1028_s1 }
  0x7c   : > { %1288 = vmatpush3.msra.mxu0 %v405_v3  ;;  %1323 = vmatpush3.msra.mxu1 %v388_v4  ;;  %v402_v10 = vld [vmem:[#allocation7 + $0xe0] sm:$0xff]  ;;  %v401_v12 = vld [vmem:[#allocation7 + $0xd8] sm:$0xff]  ;;  %v400_v14 = vld [vmem:[#allocation7 + $0xd0] sm:$0xff]  ;;  %s1024_s21 = sadd.s32 %s1840_s27, %s1164_s19  ;;  %s2322_s24 = sld [smem:[#allocation25_spill]] }
  0x7d   : > { %1289 = vmatprep.subr.mxu0 %v1865_v5  ;;  %1324 = vmatprep.subr.mxu1 %v1865_v5  ;;  %v385_v11 = vld [vmem:[#allocation7 + $0x60] sm:$0xff]  ;;  %v384_v13 = vld [vmem:[#allocation7 + $0x58] sm:$0xff]  ;;  %v383_v15 = vld [vmem:[#allocation7 + $0x50] sm:$0xff]  ;;  %s1165_s10 = sshll.u32 %s1024_s21, 7  ;;  %s1013_s28 = scalar_lea.sflag [#allocation6], %s2060_s7 }
  0x7e   : > { %1290 = vmatpush3.msra.mxu0 %v404_v6  ;;  %1325 = vmatpush3.msra.mxu1 %v387_v7  ;;  %v2093_v16 = vld [vmem:[%s2064_s22] sm:$0xff]  ;;  %v399_v17 = vld [vmem:[#allocation7 + $0xc8] sm:$0xff]  ;;  %v398_v19 = vld [vmem:[#allocation7 + $0xc0] sm:$0xff]  ;;  %s1752_s6 = scalar_lea.vmem %s1029_s1, 128  ;;  %s1867_s11 = smov [#allocation12]  }
  0x7f   : > { %1291 = vmatprep.subr.mxu0 %v1865_v5  ;;  %1326 = vmatprep.subr.mxu1 %v1865_v5  ;;  %v382_v18 = vld [vmem:[#allocation7 + $0x48] sm:$0xff]  ;;  %371 = vst [vmem:[#allocation2 + $0x8] sm:$0xff] %v2093_v16  ;;  %v381_v20 = vld [vmem:[#allocation7 + $0x40] sm:$0xff]  ;;  %v397_v21 = vld [vmem:[#allocation7 + $0xb8] sm:$0xff]  ;;  %p1753_p7 = scmp.ne.s32.totalorder %s1029_s1, %s1752_s6  ;;  %s1756_s27 = sshll.u32 %s1867_s11, 4  ;;  %s1757_s27 = int_to_ptr.vmem [resolvable:$false] %s1756_s27 }
  0x80   : > { %1292 = vmatpush3.msra.mxu0 %v403_v8  ;;  %1327 = vmatpush3.msra.mxu1 %v386_v9  ;;  %v380_v22 = vld [vmem:[#allocation7 + $0x38] sm:$0xff]  ;;  %v396_v23 = vld [vmem:[#allocation7 + $0xb0] sm:$0xff]  ;;  %v395_v25 = vld [vmem:[#allocation7 + $0xa8] sm:$0xff]  ;;  %s1758_s13 = scalar_lea.vmem %s1757_s27, 256  ;;  %p1759_p12 = scmp.lt.s32.totalorder %s1029_s1, %s1757_s27 }
  0x81   : > { %1293 = vmatprep.subr.mxu0 %v1865_v5  ;;  %1328 = vmatprep.subr.mxu1 %v1865_v5  ;;  %v379_v24 = vld [vmem:[#allocation7 + $0x30] sm:$0xff]  ;;  %v378_v26 = vld [vmem:[#allocation7 + $0x28] sm:$0xff]  ;;  %v394_v27 = vld [vmem:[#allocation7 + $0xa0] sm:$0xff]  ;;  %p1754_p6 = pnand %p1753_p7, %p2023_p3  ;;  %p1760_p1 = scmp.lt.s32.totalorder %s1758_s13, %s1752_s6 }
  0x82   : > { %1294 = vmatpush3.msra.mxu0 %v402_v10  ;;  %1329 = vmatpush3.msra.mxu1 %v385_v11  ;;  %v377_v28 = vld [vmem:[#allocation7 + $0x20] sm:$0xff]  ;;  %v393_v29 = vld [vmem:[#allocation7 + $0x98] sm:$0xff]  ;;  %v392_v31 = vld [vmem:[#allocation7 + $0x90] sm:$0xff]  ;;  %s2323_s14 = smov %s2322_s24  ;;  %s1026_s22 = scalar_lea.hbm %s2322_s24, %s1165_s10 }
  0x83   : > { %1295 = vmatprep.subr.mxu0 %v1865_v5  ;;  %1330 = vmatprep.subr.mxu1 %v1865_v5  ;;  %v376_v30 = vld [vmem:[#allocation7 + $0x18] sm:$0xff]  ;;  %v375_v32 = vld [vmem:[#allocation7 + $0x10] sm:$0xff]  ;;  %v391_v33 = vld [vmem:[#allocation7 + $0x88] sm:$0xff]  ;;  %p1755_p9 = pneg %p1754_p6  ;;  %p1761_p4 = por %p1760_p1, %p1759_p12 }
  0x84   : > { %1296 = vmatpush3.msra.mxu0 %v401_v12  ;;  %1331 = vmatpush3.msra.mxu1 %v384_v13  ;;  %v374_v34 = vld [vmem:[#allocation7 + $0x8] sm:$0xff]  ;;  %v390_v35 = vld [vmem:[#allocation7 + $0x80] sm:$0xff]  ;;  %v562_v39 = vld [vmem:[#allocation7 + $0x178] sm:$0xff] }
  0x85   : > { %1297 = vmatprep.subr.mxu0 %v1865_v5  ;;  %1332 = vmatprep.subr.mxu1 %v1865_v5  ;;  %v373_v37 = vld [vmem:[#allocation7] sm:$0xff]  ;;  %v561_v40 = vld [vmem:[#allocation7 + $0x170] sm:$0xff]  ;;  %v560_v41 = vld [vmem:[#allocation7 + $0x168] sm:$0xff]  ;;  %p1762_p8 = pnand %p1761_p4, %p1755_p9 }
  0x86   : > { %1298 = vmatpush3.msra.mxu0 %v400_v14  ;;  %1333 = vmatpush3.msra.mxu1 %v383_v15  ;;  %v389_v36 = vld [vmem:[#allocation2 + $0x6] sm:$0xff]  ;;  %v559_v42 = vld [vmem:[#allocation7 + $0x160] sm:$0xff]  ;;  %v556_v45 = vld [vmem:[#allocation7 + $0x148] sm:$0xff] }
  0x87   : > { %1299 = vmatprep.subr.mxu0 %v1865_v5  ;;  %1334 = vmatprep.subr.mxu1 %v1865_v5  ;;  %v372_v38 = vld [vmem:[#allocation2 + $0x4] sm:$0xff]  ;;  %v555_v46 = vld [vmem:[#allocation7 + $0x140] sm:$0xff]  ;;  %v552_v49 = vld [vmem:[#allocation7 + $0x128] sm:$0xff] }
  0x88   : > { %1300 = vmatpush3.msra.mxu0 %v399_v17  ;;  %1335 = vmatpush3.msra.mxu1 %v382_v18  ;;  %v558_v43 = vld [vmem:[#allocation7 + $0x158] sm:$0xff]  ;;  %v557_v44 = vld [vmem:[#allocation7 + $0x150] sm:$0xff]  ;;  %v551_v50 = vld [vmem:[#allocation7 + $0x120] sm:$0xff] }
  0x89   : > { %1301 = vmatprep.subr.mxu0 %v1865_v5  ;;  %1336 = vmatprep.subr.mxu1 %v1865_v5  ;;  %v554_v47 = vld [vmem:[#allocation7 + $0x138] sm:$0xff]  ;;  %v553_v48 = vld [vmem:[#allocation7 + $0x130] sm:$0xff]  ;;  %v548_v53 = vld [vmem:[#allocation7 + $0x108] sm:$0xff] }
  0x8a   : > { %1302 = vmatpush3.msra.mxu0 %v398_v19  ;;  %1337 = vmatpush3.msra.mxu1 %v381_v20  ;;  %v550_v51 = vld [vmem:[#allocation7 + $0x118] sm:$0xff]  ;;  %v549_v52 = vld [vmem:[#allocation7 + $0x110] sm:$0xff]  ;;  %v547_v54 = vld [vmem:[#allocation7 + $0x100] sm:$0xff] }
  0x8b   : > { %1303 = vmatprep.subr.mxu0 %v1865_v5  ;;  %1338 = vmatprep.subr.mxu1 %v1865_v5  ;;  %v677_v55 = vld [vmem:[#allocation9 + $0xf8] sm:$0xff]  ;;  %v676_v57 = vld [vmem:[#allocation9 + $0xf0] sm:$0xff]  ;;  %v675_v59 = vld [vmem:[#allocation9 + $0xe8] sm:$0xff] }
  0x8c   : > { %1304 = vmatpush3.msra.mxu0 %v397_v21  ;;  %1339 = vmatpush3.msra.mxu1 %v380_v22  ;;  %v660_v56 = vld [vmem:[#allocation9 + $0x78] sm:$0xff]  ;;  %v659_v58 = vld [vmem:[#allocation9 + $0x70] sm:$0xff]  ;;  %v658_v60 = vld [vmem:[#allocation9 + $0x68] sm:$0xff] }
  0x8d   : > { %1305 = vmatprep.subr.mxu0 %v1865_v5  ;;  %1340 = vmatprep.subr.mxu1 %v1865_v5  ;;  %v674_v61 = vld [vmem:[#allocation9 + $0xe0] sm:$0xff]  ;;  %v673_v63 = vld [vmem:[#allocation9 + $0xd8] sm:$0xff]  ;;  %v672_v1 = vld [vmem:[#allocation9 + $0xd0] sm:$0xff] }
  0x8e   : > { %1306 = vmatpush3.msra.mxu0 %v396_v23  ;;  %1341 = vmatpush3.msra.mxu1 %v379_v24  ;;  %v657_v62 = vld [vmem:[#allocation9 + $0x60] sm:$0xff]  ;;  %v656_v0 = vld [vmem:[#allocation9 + $0x58] sm:$0xff]  ;;  %v655_v2 = vld [vmem:[#allocation9 + $0x50] sm:$0xff] }
  0x8f   : > { %1307 = vmatprep.subr.mxu0 %v1865_v5  ;;  %1342 = vmatprep.subr.mxu1 %v1865_v5  ;;  %v671_v3 = vld [vmem:[#allocation9 + $0xc8] sm:$0xff]  ;;  %v670_v6 = vld [vmem:[#allocation9 + $0xc0] sm:$0xff]  ;;  %v669_v8 = vld [vmem:[#allocation9 + $0xb8] sm:$0xff] }
  0x90   : > { %1308 = vmatpush3.msra.mxu0 %v395_v25  ;;  %1343 = vmatpush3.msra.mxu1 %v378_v26  ;;  %v654_v4 = vld [vmem:[#allocation9 + $0x48] sm:$0xff]  ;;  %v653_v7 = vld [vmem:[#allocation9 + $0x40] sm:$0xff]  ;;  %v652_v9 = vld [vmem:[#allocation9 + $0x38] sm:$0xff] }
  0x91   : > { %1309 = vmatprep.subr.mxu0 %v1865_v5  ;;  %1344 = vmatprep.subr.mxu1 %v1865_v5  ;;  %v668_v10 = vld [vmem:[#allocation9 + $0xb0] sm:$0xff]  ;;  %v667_v12 = vld [vmem:[#allocation9 + $0xa8] sm:$0xff]  ;;  %v666_v14 = vld [vmem:[#allocation9 + $0xa0] sm:$0xff] }
  0x92   : > { %1310 = vmatpush3.msra.mxu0 %v394_v27  ;;  %1345 = vmatpush3.msra.mxu1 %v377_v28  ;;  %v651_v11 = vld [vmem:[#allocation9 + $0x30] sm:$0xff]  ;;  %v650_v13 = vld [vmem:[#allocation9 + $0x28] sm:$0xff]  ;;  %v649_v15 = vld [vmem:[#allocation9 + $0x20] sm:$0xff] }
  0x93   : > { %1311 = vmatprep.subr.mxu0 %v1865_v5  ;;  %1346 = vmatprep.subr.mxu1 %v1865_v5  ;;  %v665_v17 = vld [vmem:[#allocation9 + $0x98] sm:$0xff]  ;;  %v664_v19 = vld [vmem:[#allocation9 + $0x90] sm:$0xff]  ;;  %v663_v21 = vld [vmem:[#allocation9 + $0x88] sm:$0xff] }
  0x94   : > { %1312 = vmatpush3.msra.mxu0 %v393_v29  ;;  %1347 = vmatpush3.msra.mxu1 %v376_v30  ;;  %v648_v18 = vld [vmem:[#allocation9 + $0x18] sm:$0xff]  ;;  %v647_v20 = vld [vmem:[#allocation9 + $0x10] sm:$0xff]  ;;  %v646_v22 = vld [vmem:[#allocation9 + $0x8] sm:$0xff] }
  0x95   : > { %1313 = vmatprep.subr.mxu0 %v1865_v5  ;;  %1348 = vmatprep.subr.mxu1 %v1865_v5  ;;  %v662_v23 = vld [vmem:[#allocation9 + $0x80] sm:$0xff] }
  0x96   : > { %1314 = vmatpush3.msra.mxu0 %v392_v31  ;;  %1349 = vmatpush3.msra.mxu1 %v375_v32  ;;  %v645_v24 = vld [vmem:[#allocation9] sm:$0xff]  ;;  %v1160_v31 = vld [vmem:[%s2280_s2] ss:$0 sm:$0xff] }
  0x97   : > { %1315 = vmatprep.subr.mxu0 %v1865_v5  ;;  %1350 = vmatprep.subr.mxu1 %v1865_v5 }
  0x98   : > { %1316 = vmatpush3.msra.mxu0 %v391_v33  ;;  %1351 = vmatpush3.msra.mxu1 %v374_v34 }
  0x99   : > { %1317 = vmatprep.subr.mxu0 %v1865_v5  ;;  %1319 = vmatprep.mubr.msk.f32.mxu0 %vm1866_vm0, %v1865_v5 }
  0x9a   : > { %1318 = vmatpush3.msra.mxu0 %v390_v35  ;;  %1352 = vmatprep.subr.mxu1 %v1865_v5 }
  0x9b   : > { %1320 = vmatmul.mubr.f32.vlgmr.msra.gmra.mxu0 %v389_v36  ;;  %1353 = vmatpush3.msra.mxu1 %v373_v37  ;;  %v834_v36 = vld [vmem:[#allocation9 + $0x178] sm:$0xff] }
  0x9c   : > { %1354 = vmatprep.mubr.msk.f32.mxu1 %vm1866_vm0, %v1865_v5  ;;  %1357 = vmatprep.subr.mxu0 %v1865_v5  ;;  %v931_v37 = vld [vmem:[#allocation10 + $0x78] sm:$0xff] }
  0x9d   : > { %1355 = vmatmul.mubr.f32.vlgmr.msra.gmra.mxu1 %v372_v38  ;;  %1358 = vmatpush3.msra.mxu0 %v562_v39 }
  0x9e   : > { %1359 = vmatprep.subr.mxu0 %v1865_v5  ;;  %1389 = vmatprep.mubr.msk.f32.mxu0 %vm1866_vm0, %v1865_v5 }
  0x9f   : > { %1360 = vmatpush3.msra.mxu0 %v561_v40  ;;  %1392 = vmatprep.subr.mxu1 %v1865_v5  ;;  %v833_v40 = vld [vmem:[#allocation9 + $0x170] sm:$0xff] }
  0xa0   : > { %1361 = vmatprep.subr.mxu0 %v1865_v5  ;;  %1424 = vmatprep.mubr.msk.f32.mxu1 %vm1866_vm0, %v1865_v5 }
  0xa1   : > { %1362 = vmatpush3.msra.mxu0 %v560_v41  ;;  %1393 = vmatpush3.msra.mxu1 %v677_v55  ;;  %v930_v41 = vld [vmem:[#allocation10 + $0x70] sm:$0xff]  ;;  %v923_v55 = vld [vmem:[#allocation10 + $0x38] sm:$0xff] }
  0xa2   : > { %1363 = vmatprep.subr.mxu0 %v1865_v5  ;;  %1394 = vmatprep.subr.mxu1 %v1865_v5 }
  0xa3   : > { %1364 = vmatpush3.msra.mxu0 %v559_v42  ;;  %1395 = vmatpush3.msra.mxu1 %v676_v57  ;;  %v832_v42 = vld [vmem:[#allocation9 + $0x168] sm:$0xff]  ;;  %v922_v57 = vld [vmem:[#allocation10 + $0x30] sm:$0xff] }
  0xa4   : > { %1365 = vmatprep.subr.mxu0 %v1865_v5  ;;  %1396 = vmatprep.subr.mxu1 %v1865_v5 }
  0xa5   : > { %1366 = vmatpush3.msra.mxu0 %v558_v43  ;;  %1397 = vmatpush3.msra.mxu1 %v675_v59  ;;  %v929_v43 = vld [vmem:[#allocation10 + $0x68] sm:$0xff] }
  0xa6   : > { %1367 = vmatprep.subr.mxu0 %v1865_v5  ;;  %1398 = vmatprep.subr.mxu1 %v1865_v5  ;;  %v921_v59 = vld [vmem:[#allocation10 + $0x28] sm:$0xff] }
  0xa7   : > { %1368 = vmatpush3.msra.mxu0 %v557_v44  ;;  %1399 = vmatpush3.msra.mxu1 %v674_v61  ;;  %v831_v44 = vld [vmem:[#allocation9 + $0x160] sm:$0xff] }
  0xa8   : > { %1369 = vmatprep.subr.mxu0 %v1865_v5  ;;  %1400 = vmatprep.subr.mxu1 %v1865_v5  ;;  %v920_v61 = vld [vmem:[#allocation10 + $0x20] sm:$0xff] }
  0xa9   : > { %1370 = vmatpush3.msra.mxu0 %v556_v45  ;;  %1401 = vmatpush3.msra.mxu1 %v673_v63  ;;  %v928_v45 = vld [vmem:[#allocation10 + $0x60] sm:$0xff]  ;;  %v919_v63 = vld [vmem:[#allocation10 + $0x18] sm:$0xff] }
  0xaa   : > { %1371 = vmatprep.subr.mxu0 %v1865_v5  ;;  %1402 = vmatprep.subr.mxu1 %v1865_v5 }
  0xab   : > { %1372 = vmatpush3.msra.mxu0 %v555_v46  ;;  %1403 = vmatpush3.msra.mxu1 %v672_v1  ;;  %v830_v46 = vld [vmem:[#allocation9 + $0x158] sm:$0xff]  ;;  %v918_v1 = vld [vmem:[#allocation10 + $0x10] sm:$0xff] }
  0xac   : > { %1373 = vmatprep.subr.mxu0 %v1865_v5  ;;  %1404 = vmatprep.subr.mxu1 %v1865_v5 }
  0xad   : > { %1374 = vmatpush3.msra.mxu0 %v554_v47  ;;  %1405 = vmatpush3.msra.mxu1 %v671_v3  ;;  %v927_v47 = vld [vmem:[#allocation10 + $0x58] sm:$0xff]  ;;  %v917_v3 = vld [vmem:[#allocation10 + $0x8] sm:$0xff] }
  0xae   : > { %1375 = vmatprep.subr.mxu0 %v1865_v5  ;;  %1406 = vmatprep.subr.mxu1 %v1865_v5 }
  0xaf   : > { %1376 = vmatpush3.msra.mxu0 %v553_v48  ;;  %1407 = vmatpush3.msra.mxu1 %v670_v6  ;;  %v829_v48 = vld [vmem:[#allocation9 + $0x150] sm:$0xff]  ;;  %v916_v6 = vld [vmem:[#allocation10] sm:$0xff] }
  0xb0   : > { %1377 = vmatprep.subr.mxu0 %v1865_v5  ;;  %1408 = vmatprep.subr.mxu1 %v1865_v5 }
  0xb1   : > { %1378 = vmatpush3.msra.mxu0 %v552_v49  ;;  %1409 = vmatpush3.msra.mxu1 %v669_v8  ;;  %v926_v49 = vld [vmem:[#allocation10 + $0x50] sm:$0xff] }
  0xb2   : > { %1379 = vmatprep.subr.mxu0 %v1865_v5  ;;  %1410 = vmatprep.subr.mxu1 %v1865_v5 }
  0xb3   : > { %1380 = vmatpush3.msra.mxu0 %v551_v50  ;;  %1411 = vmatpush3.msra.mxu1 %v668_v10  ;;  %v828_v50 = vld [vmem:[#allocation9 + $0x148] sm:$0xff] }
  0xb4   : > { %1381 = vmatprep.subr.mxu0 %v1865_v5  ;;  %1412 = vmatprep.subr.mxu1 %v1865_v5 }
  0xb5   : > { %1382 = vmatpush3.msra.mxu0 %v550_v51  ;;  %1413 = vmatpush3.msra.mxu1 %v667_v12  ;;  %v925_v51 = vld [vmem:[#allocation10 + $0x48] sm:$0xff] }
  0xb6   : > { %1383 = vmatprep.subr.mxu0 %v1865_v5  ;;  %1414 = vmatprep.subr.mxu1 %v1865_v5 }
  0xb7   : > { %1384 = vmatpush3.msra.mxu0 %v549_v52  ;;  %1415 = vmatpush3.msra.mxu1 %v666_v14  ;;  %v827_v52 = vld [vmem:[#allocation9 + $0x140] sm:$0xff]  ;;  %v1162_v14 = vld [vmem:[%s2320_s16] ss:$0 sm:$0xff] }
  0xb8   : > { %1385 = vmatprep.subr.mxu0 %v1865_v5  ;;  %1416 = vmatprep.subr.mxu1 %v1865_v5 }
  0xb9   : > { %1386 = vmatpush3.msra.mxu0 %v548_v53  ;;  %1417 = vmatpush3.msra.mxu1 %v665_v17  ;;  %v924_v53 = vld [vmem:[#allocation10 + $0x40] sm:$0xff] }
  0xba   : > { %1387 = vmatprep.subr.mxu0 %v1865_v5  ;;  %1418 = vmatprep.subr.mxu1 %v1865_v5 }
  0xbb   : > { %1388 = vmatpush3.msra.mxu0 %v547_v54  ;;  %1419 = vmatpush3.msra.mxu1 %v664_v19  ;;  %v826_v54 = vld [vmem:[#allocation9 + $0x138] sm:$0xff] }
  0xbc   : > { %1390 = vmatmul.mubr.f32.vlgmr.msra.gmra.mxu0 %v2093_v16  ;;  %1427 = vmatprep.subr.mxu0 %v1865_v5 }
  0xbd   : > { %1459 = vmatprep.mubr.msk.f32.mxu0 %vm1866_vm0, %v1865_v5  ;;  %1428 = vmatpush3.msra.mxu0 %v660_v56  ;;  %v825_v56 = vld [vmem:[#allocation9 + $0x130] sm:$0xff] }
  0xbe   : > { %1429 = vmatprep.subr.mxu0 %v1865_v5  ;;  %1420 = vmatprep.subr.mxu1 %v1865_v5 }
  0xbf   : > { %1430 = vmatpush3.msra.mxu0 %v659_v58  ;;  %1421 = vmatpush3.msra.mxu1 %v663_v21  ;;  %v824_v58 = vld [vmem:[#allocation9 + $0x128] sm:$0xff] }
  0xc0   : > { %1431 = vmatprep.subr.mxu0 %v1865_v5  ;;  %1422 = vmatprep.subr.mxu1 %v1865_v5 }
  0xc1   : > { %1432 = vmatpush3.msra.mxu0 %v658_v60  ;;  %1423 = vmatpush3.msra.mxu1 %v662_v23  ;;  %v823_v60 = vld [vmem:[#allocation9 + $0x120] sm:$0xff] }
  0xc2   : > { %1433 = vmatprep.subr.mxu0 %v1865_v5  ;;  %1462 = vmatprep.subr.mxu1 %v1865_v5 }
  0xc3   : > { %1434 = vmatpush3.msra.mxu0 %v657_v62  ;;  %v822_v62 = vld [vmem:[#allocation9 + $0x118] sm:$0xff] }
  0xc4   : > { %1435 = vmatprep.subr.mxu0 %v1865_v5 }
  0xc5   : > { %1436 = vmatpush3.msra.mxu0 %v656_v0  ;;  %v821_v0 = vld [vmem:[#allocation9 + $0x110] sm:$0xff] }
  0xc6   : > { %1437 = vmatprep.subr.mxu0 %v1865_v5 }
  0xc7   : > { %1438 = vmatpush3.msra.mxu0 %v655_v2  ;;  %v820_v2 = vld [vmem:[#allocation9 + $0x108] sm:$0xff] }
  0xc8   : > { %1439 = vmatprep.subr.mxu0 %v1865_v5 }
  0xc9   : > { %1440 = vmatpush3.msra.mxu0 %v654_v4  ;;  %v819_v4 = vld [vmem:[#allocation9 + $0x100] sm:$0xff] }
  0xca   : > { %1441 = vmatprep.subr.mxu0 %v1865_v5 }
  0xcb   : > { %1442 = vmatpush3.msra.mxu0 %v653_v7 }
  0xcc   : > { %1443 = vmatprep.subr.mxu0 %v1865_v5 }
  0xcd   : > { %1444 = vmatpush3.msra.mxu0 %v652_v9 }
  0xce   : > { %1445 = vmatprep.subr.mxu0 %v1865_v5 }
  0xcf   : > { %1446 = vmatpush3.msra.mxu0 %v651_v11 }
  0xd0   : > { %1447 = vmatprep.subr.mxu0 %v1865_v5 }
  0xd1   : > { %1448 = vmatpush3.msra.mxu0 %v650_v13  ;;  %v1161_v13 = vld [vmem:[%s2282_s4] ss:$0 sm:$0xff] }
  0xd2   : > { %1449 = vmatprep.subr.mxu0 %v1865_v5 }
  0xd3   : > { %1450 = vmatpush3.msra.mxu0 %v649_v15 }
  0xd4   : > { %1451 = vmatprep.subr.mxu0 %v1865_v5 }
  0xd5   : > { %1452 = vmatpush3.msra.mxu0 %v648_v18 }
  0xd6   : > { %1453 = vmatprep.subr.mxu0 %v1865_v5 }
  0xd7   : > { %1454 = vmatpush3.msra.mxu0 %v647_v20 }
  0xd8   : > { %1455 = vmatprep.subr.mxu0 %v1865_v5 }
  0xd9   : > { %1456 = vmatpush3.msra.mxu0 %v646_v22 }
  0xda   : > { %1457 = vmatprep.subr.mxu0 %v1865_v5 }
  0xdb   : > { %1458 = vmatpush3.msra.mxu0 %v645_v24 }
  0xdc   : > { %1497 = vmatprep.subr.mxu0 %v1865_v5 }
 0x15b   : > { %v472_v25 = vpop.f32.mrf.mxu0 }
 0x15d   : > { %v542_v26 = vpop.f32.mrf.mxu1  ;;  %v1321_v27 = vpop.f32.mrf.mxu0 }
 0x15e   : > { %v543_v29 = vadd.f32 %v542_v26, %v472_v25 }
 0x15f   : > { %v1356_v28 = vpop.f32.mrf.mxu1 }
 0x17c   : > { %v629_v30 = vpop.f32.mrf.mxu0 }
 0x17d   : > { %v633_v32 = vadd.f32 %v629_v30, %v543_v29 }
 0x17e   : > { %v1391_v33 = vpop.f32.mrf.mxu0 }
 0x17f   : > { %v2182_v34 = vadd.f32 %v1160_v31, %v633_v32 }
 0x181   : > { %v642_v35 = vmax.f32 %v2182_v34, 0.0 }
 0x183   : > { %643 = vst [vmem:[#allocation3 + $0x8] sm:$0xff] %v642_v35 }
 0x18a   : > { %v661_v38 = vld [vmem:[#allocation3 + $0x6] sm:$0xff] }
 0x18b   : > { %v644_v39 = vld [vmem:[#allocation3 + $0x4] sm:$0xff]  ;;  %1425 = vmatmul.mubr.f32.vlgmr.msra.gmra.mxu1 %v661_v38 }
 0x18c   : > { %1460 = vmatmul.mubr.f32.vlgmr.msra.gmra.mxu0 %v644_v39  ;;  %1463 = vmatpush3.msra.mxu1 %v834_v36 }
 0x18d   : > { %1498 = vmatpush3.msra.mxu0 %v931_v37  ;;  %1464 = vmatprep.subr.mxu1 %v1865_v5 }
 0x18e   : > { %1499 = vmatprep.subr.mxu0 %v1865_v5  ;;  %1465 = vmatpush3.msra.mxu1 %v833_v40 }
 0x18f   : > { %1500 = vmatpush3.msra.mxu0 %v930_v41  ;;  %1466 = vmatprep.subr.mxu1 %v1865_v5 }
 0x190   : > { %1501 = vmatprep.subr.mxu0 %v1865_v5  ;;  %1467 = vmatpush3.msra.mxu1 %v832_v42 }
 0x191   : > { %1502 = vmatpush3.msra.mxu0 %v929_v43  ;;  %1468 = vmatprep.subr.mxu1 %v1865_v5 }
 0x192   : > { %1503 = vmatprep.subr.mxu0 %v1865_v5  ;;  %1469 = vmatpush3.msra.mxu1 %v831_v44 }
 0x193   : > { %1504 = vmatpush3.msra.mxu0 %v928_v45  ;;  %1470 = vmatprep.subr.mxu1 %v1865_v5 }
 0x194   : > { %1505 = vmatprep.subr.mxu0 %v1865_v5  ;;  %1471 = vmatpush3.msra.mxu1 %v830_v46 }
 0x195   : > { %1506 = vmatpush3.msra.mxu0 %v927_v47  ;;  %1472 = vmatprep.subr.mxu1 %v1865_v5 }
 0x196   : > { %1507 = vmatprep.subr.mxu0 %v1865_v5  ;;  %1473 = vmatpush3.msra.mxu1 %v829_v48 }
 0x197   : > { %1508 = vmatpush3.msra.mxu0 %v926_v49  ;;  %1474 = vmatprep.subr.mxu1 %v1865_v5 }
 0x198   : > { %1509 = vmatprep.subr.mxu0 %v1865_v5  ;;  %1475 = vmatpush3.msra.mxu1 %v828_v50 }
 0x199   : > { %1510 = vmatpush3.msra.mxu0 %v925_v51  ;;  %1476 = vmatprep.subr.mxu1 %v1865_v5 }
 0x19a   : > { %1511 = vmatprep.subr.mxu0 %v1865_v5  ;;  %1477 = vmatpush3.msra.mxu1 %v827_v52 }
 0x19b   : > { %1512 = vmatpush3.msra.mxu0 %v924_v53  ;;  %1478 = vmatprep.subr.mxu1 %v1865_v5 }
 0x19c   : > { %1513 = vmatprep.subr.mxu0 %v1865_v5  ;;  %1479 = vmatpush3.msra.mxu1 %v826_v54 }
 0x19d   : > { %1514 = vmatpush3.msra.mxu0 %v923_v55  ;;  %1480 = vmatprep.subr.mxu1 %v1865_v5 }
 0x19e   : > { %1515 = vmatprep.subr.mxu0 %v1865_v5  ;;  %1481 = vmatpush3.msra.mxu1 %v825_v56 }
 0x19f   : > { %1516 = vmatpush3.msra.mxu0 %v922_v57  ;;  %1482 = vmatprep.subr.mxu1 %v1865_v5 }
 0x1a0   : > { %1517 = vmatprep.subr.mxu0 %v1865_v5  ;;  %1483 = vmatpush3.msra.mxu1 %v824_v58 }
 0x1a1   : > { %1518 = vmatpush3.msra.mxu0 %v921_v59  ;;  %1484 = vmatprep.subr.mxu1 %v1865_v5 }
 0x1a2   : > { %1519 = vmatprep.subr.mxu0 %v1865_v5  ;;  %1485 = vmatpush3.msra.mxu1 %v823_v60 }
 0x1a3   : > { %1520 = vmatpush3.msra.mxu0 %v920_v61  ;;  %1486 = vmatprep.subr.mxu1 %v1865_v5 }
 0x1a4   : > { %1521 = vmatprep.subr.mxu0 %v1865_v5  ;;  %1487 = vmatpush3.msra.mxu1 %v822_v62 }
 0x1a5   : > { %1522 = vmatpush3.msra.mxu0 %v919_v63  ;;  %1488 = vmatprep.subr.mxu1 %v1865_v5 }
 0x1a6   : > { %1523 = vmatprep.subr.mxu0 %v1865_v5  ;;  %1489 = vmatpush3.msra.mxu1 %v821_v0 }
 0x1a7   : > { %1524 = vmatpush3.msra.mxu0 %v918_v1  ;;  %1490 = vmatprep.subr.mxu1 %v1865_v5 }
 0x1a8   : > { %1525 = vmatprep.subr.mxu0 %v1865_v5  ;;  %1491 = vmatpush3.msra.mxu1 %v820_v2 }
 0x1a9   : > { %1494 = vmatprep.mubr.msk.f32.mxu1 %vm1866_vm0, %v1865_v5  ;;  %1492 = vmatprep.subr.mxu1 %v1865_v5 }
 0x1aa   : > { %1526 = vmatpush3.msra.mxu0 %v917_v3  ;;  %1493 = vmatpush3.msra.mxu1 %v819_v4 }
 0x1ab   : > { %1527 = vmatprep.subr.mxu0 %v1865_v5  ;;  %1495 = vmatmul.mubr.f32.vlgmr.msra.gmra.mxu1 %v642_v35 }
 0x1ac   : > { %1528 = vmatpush3.msra.mxu0 %v916_v6  ;;  %1529 = vmatprep.mubr.msk.f32.mxu0 %vm1866_vm0, %v1865_v5 }
 0x1ad   : > { %1530 = vmatmul.mubr.f32.vlgmr.msra.gmra.mxu0 %v2093_v16 }
 0x24b   : > { %v744_v7 = vpop.f32.mrf.mxu1 }
 0x24c   : > { %v814_v8 = vpop.f32.mrf.mxu0 }
 0x24d   : > { %v1426_v9 = vpop.f32.mrf.mxu1  ;;  %v815_v11 = vadd.f32 %v814_v8, %v744_v7 }
 0x24e   : > { %v1461_v10 = vpop.f32.mrf.mxu0 }
 0x26b   : > { %v901_v12 = vpop.f32.mrf.mxu1 }
 0x26c   : > { %v905_v5 = vadd.f32 %v901_v12, %v815_v11 }
 0x26d   : > { %v1496_v16 = vpop.f32.mrf.mxu1  ;;  %v1005_v15 = vpop.f32.mrf.mxu0 }
 0x26e   : > { %v913_v17 = vadd.f32 %v1161_v13, %v905_v5  ;;  %v1006_v18 = vadd.f32 %v1162_v14, %v1005_v15 }
 0x26f   : > { %v1531_v19 = vpop.f32.mrf.mxu0 }
 0x270   : > { %v914_v20 = vmax.f32 %v913_v17, 0.0 }
 0x272   : > { %v1009_v21 = vadd.f32 %v1006_v18, %v914_v20 }
 0x274   : > { %v1010_v22 = vmax.f32 %v1009_v21, 0.0 }
 0x276   : > { %1011 = vst [vmem:[%s2078_s3] sm:$0xff] %v1010_v22 }
 0x277   : > { %1765 = shalt.err (!%p1762_p8)
}
 0x278   : > { %s1766_s15 = scalar_lea.hbm %s1026_s22, 128  ;;  %s1770_s23 = scalar_lea.hbm %s2323_s14, 512 }
 0x279   : > { %p1767_p11 = scmp.ne.s32.totalorder %s1026_s22, %s1766_s15  ;;  %p1771_p0 = scmp.lt.s32.totalorder %s1026_s22, %s2323_s14 }
 0x27a   : > { %p1772_p5 = scmp.lt.s32.totalorder %s1770_s23, %s1766_s15 }
 0x27b   : > { %p1768_p13 = pnand %p1767_p11, %p2023_p3 }
 0x27c   : > { %p1773_p2 = por %p1772_p5, %p1771_p0 }
 0x27d   : > { %p1769_p10 = pneg %p1768_p13 }
 0x27f   : > { %p1774_p7 = pnand %p1773_p2, %p1769_p10 }
 0x281   : > { %1777 = shalt.err (!%p1774_p7)
}
 0x282   : > { %1546 = dma.vmem_to_hbm [thread:$0]  (%p2023_p3), %s1029_s1, 128, %s1026_s22, %s1013_s28  }
 0x283 PF: > { %s2324_s19 = sld [smem:[#allocation17_spill]]  ;;  %p1573_p6 = scmp.ge.s32.totalorder %s1856_s8, 2 }
 0x284   : > { %s2325_s21 = sld [smem:[#allocation18_spill]] }
 0x289   : > { %s1040_s10 = sand.u32 1, %s2324_s19  }
 0x28a   : > { %p2326_p9 = scmp.ne.s32.totalorder %s2325_s21, 0  ;;  %s1041_s20 = scalar_lea.sflag [#allocation6], %s1040_s10 }
 0x28c   : > { %p1563_p12 = pnand %p1573_p6, %p2326_p9 }
 0x28e   : > { %p1564_p1 = pneg %p1563_p12 }
 0x290   : > { %1823 = dma.done.wait (%p1564_p1), %s1041_s20, 128  }
 0x291   : > { %1825 = vsyncadd (%p1564_p1), %s1041_s20, 4294967168  ;;  %s25_s8 = sadd.s32 1, %s1856_s8   ;;  %s2327_s12 = sld [smem:[#allocation19_spill]] }
 0x292   : > { %p22_p4 = scmp.ge.s32.totalorder %s25_s8, 6   ;;  %s2328_s24 = smov %s1832_s25 }
 0x293   : > { %s2329_s25 = smov %s1836_s26  ;;  %s2330_s26 = smov %s2040_s5 }
 0x294   : > { %s2331_s27 = smov %s1848_s29  ;;  %s2332_s28 = smov %s1852_s30 }
 0x295   : > { %s2334_s30 = smov %s2340_s18  ;;  %24 = sbr.rel (!%p22_p4) target bundleno = 15 (0xf), region = 113 }
 0x297   : > { %s2333_s29 = smov %s2327_s12 }
 0x29a   :  { %1046 = vsyncpa [#allocation5], 1 }
 0x29b   :  { %1048 = vsyncpa [#allocation5 + $0x1], 1 }
 0x29c   :  { %1049 = vsyncpa [#allocation8], 1 }
 0x29d   :  { %1050 = vsyncpa [#allocation11], 1 }
 0x29e   :  { %1051 = vsyncpa [#allocation6], 1 }
 0x29f   :  { %1053 = vsyncpa [#allocation6 + $0x1], 1 }

// kernel: tpu_custom_call.1
= control target key start
LH: loop header
LB: loop body
LE: loop exit
PB: predicated region body
PF: predicated region fallthrough
CT: control target
= control target key end

     0   :  { %s2278_s0 = inlined_call_operand.hbm [shape: f32[2,16,128], index: 0, kind: input, shape index: {}]   ;;  %s2279_s1 = inlined_call_operand.hbm [shape: f32[384,128], index: 1, kind: input, shape index: {}]   ;;  %s2280_s2 = inlined_call_operand.vmem [shape: f32[1,128], index: 2, kind: input, shape index: {}]   ;;  %s2281_s3 = inlined_call_operand.hbm [shape: f32[384,128], index: 3, kind: input, shape index: {}]   ;;  %s2282_s4 = inlined_call_operand.vmem [shape: f32[1,128], index: 4, kind: input, shape index: {}]   ;;  %s2283_s5 = inlined_call_operand.hbm [shape: f32[128,128], index: 5, kind: input, shape index: {}]   ;;  %s2284_s6 = inlined_call_operand.vmem [shape: f32[1,128], index: 6, kind: input, shape index: {}]   ;;  %s2285_s7 = inlined_call_operand.hbm [shape: f32[2,16,128], index: 7, kind: output, shape index: {}]  }
   0x1   :  { %2296 = sst [smem:[#allocation21_spill]] %s2279_s1 }
   0x2   :  { %2297 = sst [smem:[#allocation22_spill]] %s2281_s3 }
   0x3   :  { %2298 = sst [smem:[#allocation23_spill]] %s2283_s5 }
   0x4   :  { %2299 = sst [smem:[#allocation24_spill]] %s2284_s6 }
   0x5   :  { %2300 = sst [smem:[#allocation25_spill]] %s2285_s7 }
   0x6   :  { %12 = vsyncpa [#allocation5], 0 }
   0x7   :  { %14 = vsyncpa [#allocation5 + $0x1], 0 }
   0x8   :  { %15 = vsyncpa [#allocation8], 0 }
   0x9   :  { %16 = vsyncpa [#allocation11], 0 }
   0xa   :  { %17 = vsyncpa [#allocation6], 0 }
   0xb   :  { %19 = vsyncpa [#allocation6 + $0x1], 0  ;;  %s1908_s24 = smov 0   ;;  %s1910_s25 = smov 0  }
   0xc   :  { %s1912_s26 = smov 0   ;;  %s1914_s27 = smov 0  }
   0xd   :  { %s1916_s28 = smov 0   ;;  %s1918_s29 = smov 0  }
   0xe   :  { %s1920_s30 = smov 0   ;;  %s1922_s8 = smov 0  }
   0xf LB: > { %2301 = sst [smem:[#allocation17_spill]] %s1828_s24  ;;  %s1142_s9 = sadd.s32 4294967295, %s1856_s8   ;;  %s1856_s8 = sphi %s1922_s8, %s25_s8   ;;  %s1852_s30 = sphi %s1920_s30, %s2334_s30   ;;  %s1848_s29 = sphi %s1918_s29, %s2333_s29   ;;  %s1844_s28 = sphi %s1916_s28, %s2332_s28   ;;  %s1840_s27 = sphi %s1914_s27, %s2331_s27   ;;  %s1836_s26 = sphi %s1912_s26, %s2330_s26   ;;  %s1832_s25 = sphi %s1910_s25, %s2329_s25   ;;  %s1828_s24 = sphi %s1908_s24, %s2328_s24  }
  0x10   : > { %s1143_s10 = sadd.s32 4294967294, %s1856_s8   ;;  %p59_p0 = scmp.ne.s32.totalorder %s1832_s25, %s1828_s24 }
  0x11   : > { %p1952_p1 = scmp.eq.s32.totalorder %s1142_s9, 0  ;;  %p1956_p2 = scmp.eq.s32.totalorder %s1142_s9, 3 }
  0x12   : > { %p217_p3 = scmp.eq.s32.totalorder %s1143_s10, 3  ;;  %p1144_p5 = scmp.ge.s32.totalorder %s1856_s8, 1 }
  0x13   : > { %s2302_s11 = scalar_select %p1952_p1, 1, 0 }
  0x14   : > { %p1962_p4 = por %p1952_p1, %p59_p0  ;;  %p1967_p6 = por %p217_p3, %p59_p0 }
  0x15   : > { %p224_p7 = scmp.lt.s32.totalorder %s1856_s8, 5  ;;  %s1858_s16 = smov [#allocation7]  }
  0x16   : > { %s2304_s13 = scalar_select %p1962_p4, 1, 0 }
  0x17   : > { %s2305_s14 = scalar_select %p1967_p6, 1, 0 }
  0x18   : > { %p1972_p8 = pnand %p1144_p5, %p224_p7  ;;  %s236_s17 = sshll.u32 %s1858_s16, 4  ;;  %s237_s17 = int_to_ptr.vmem [resolvable:$true] %s236_s17 }
  0x19   : > { %2306 = sst [smem:[#allocation18_spill]] %s2305_s14  ;;  %s1859_s19 = smov [#allocation9]  }
  0x1a   : > { %s2307_s15 = scalar_select %p1972_p8, 1, 0 }
  0x1b   : > { %p1548_p9 = pneg %p1972_p8  ;;  %s252_s20 = sshll.u32 %s1859_s19, 4  ;;  %s253_s20 = int_to_ptr.vmem [resolvable:$true] %s252_s20 }
  0x1c   : > { %s1860_s21 = smov [#allocation10]   ;;  %s1657_s23 = scalar_lea.vmem %s237_s17, 6144 }
  0x1d   : > { %p1980_p10 = pnand %p1548_p9, %p1952_p1  ;;  %s268_s22 = sshll.u32 %s1860_s21, 4  ;;  %s269_s22 = int_to_ptr.vmem [resolvable:$true] %s268_s22 }
  0x1e   : > { %p1658_p12 = scmp.ne.s32.totalorder %s237_s17, %s1657_s23  ;;  %p1665_p3 = scmp.lt.s32.totalorder %s237_s17, %s237_s17 }
  0x1f   : > { %p1648_p11 = pneg %p1980_p10  ;;  %p1666_p5 = scmp.lt.s32.totalorder %s1657_s23, %s1657_s23 }
  0x21   : > { %p1660_p13 = pnand %p1658_p12, %p1648_p11  ;;  %p1667_p7 = por %p1666_p5, %p1665_p3 }
  0x23   : > { %p1661_p0 = pneg %p1660_p13 }
  0x25   : > { %p1668_p9 = pnand %p1667_p7, %p1661_p0 }
  0x27   : > { %1671 = shalt.err (!%p1668_p9)
}
  0x28   : > { %s1861_s9 = smov 128   ;;  %s1862_s10 = smov 8  }
  0x29   : > { %s2309_s1 = sld [smem:[#allocation21_spill]]  ;;  %s1683_s21 = scalar_lea.vmem %s253_s20, 6144 }
  0x2a   : > { %p1684_p6 = scmp.ne.s32.totalorder %s253_s20, %s1683_s21  ;;  %p1691_p1 = scmp.lt.s32.totalorder %s253_s20, %s253_s20 }
  0x2b   : > { %p1692_p4 = scmp.lt.s32.totalorder %s1683_s21, %s1683_s21 }
  0x2c   : > { %p1686_p12 = pnand %p1684_p6, %p1648_p11 }
  0x2d   : > { %p1693_p3 = por %p1692_p4, %p1691_p1 }
  0x2e   : > { %p1687_p13 = pneg %p1686_p12 }
  0x2f   : > { %1551 = dma.hbm_to_vmem [thread:$0]  (!%p1980_p10), %s2309_s1, 6144, %s237_s17, [#allocation8], %s1861_s9, %s1861_s9, %s1862_s10  }
  0x30   : > { %p1694_p0 = pnand %p1693_p3, %p1687_p13 }
  0x32   : > { %1697 = shalt.err (!%p1694_p0)
}
  0x33   : > { %s2310_s3 = sld [smem:[#allocation22_spill]]  ;;  %s1709_s17 = scalar_lea.vmem %s269_s22, 2048 }
  0x34   : > { %p1710_p5 = scmp.ne.s32.totalorder %s269_s22, %s1709_s17  ;;  %p1717_p9 = scmp.lt.s32.totalorder %s269_s22, %s269_s22 }
  0x35   : > { %p1718_p12 = scmp.lt.s32.totalorder %s1709_s17, %s1709_s17 }
  0x36   : > { %p1712_p7 = pnand %p1710_p5, %p1648_p11 }
  0x37   : > { %p1719_p8 = por %p1718_p12, %p1717_p9 }
  0x38   : > { %p1713_p6 = pneg %p1712_p7 }
  0x39   : > { %1554 = dma.hbm_to_vmem [thread:$0]  (!%p1980_p10), %s2310_s3, 6144, %s253_s20, [#allocation8], %s1861_s9, %s1861_s9, %s1862_s10  }
  0x3a   : > { %p1720_p1 = pnand %p1719_p8, %p1713_p6 }
  0x3c   : > { %1723 = shalt.err (!%p1720_p1)
}
  0x3d   : > { %s2311_s5 = sld [smem:[#allocation23_spill]]  ;;  %s34_s14 = sadd.s32 1, %s1848_s29 }
  0x3e   : > { %p35_p4 = scmp.ge.s32.totalorder %s34_s14, 2  ;;  %s37_s18 = sadd.s32 1, %s1852_s30 }
  0x3f   : > { %s46_s20 = sadd.s32 1, %s1836_s26  ;;  %p53_p8 = scmp.ne.s32.totalorder %s1836_s26, %s1832_s25 }
  0x40   : > { %s2336_s14 = smov (%p35_p4, %s34_s14), 0  ;;  %s2338_s18 = smov (!%p35_p4, %s37_s18), %s1852_s30 }
  0x41   : > { %2312 = sst [smem:[#allocation19_spill]] %s2336_s14  ;;  %s42_s21 = ssub.s32 %s1848_s29, %s2336_s14 }
  0x42   : > { %p54_p11 = scmp.eq.s32.totalorder %s1856_s8, 0  ;;  %p39_p13 = scmp.ge.s32.totalorder %s2338_s18, 2 }
  0x43   : > { %1557 = dma.hbm_to_vmem [thread:$0]  (!%p1980_p10), %s2311_s5, 2048, %s269_s22, [#allocation11], %s1861_s9, %s1861_s9, %s1862_s10  }
  0x44   : > { %p2023_p3 = por %p1956_p2, %p53_p8  ;;  %p2027_p10 = por %p54_p11, %p53_p8 }
  0x45   : > { %p1569_p0 = scmp.lt.s32.totalorder %s1856_s8, 4  ;;  %s2340_s18 = smov (%p39_p13, %s2338_s18), 0 }
  0x46   : > { %s2313_s23 = scalar_select %p2023_p3, 1, 0 }
  0x47   : > { %s285_s9 = sand.u32 1, %s1836_s26   ;;  %s1150_s10 = sshll.u32 %s1852_s30, 1 }
  0x48   : > { %2314 = sst [smem:[#allocation20_spill]] %s2313_s23  ;;  %s41_s17 = ssub.s32 %s1852_s30, %s2340_s18 }
  0x49   : > { %s43_s16 = sor.u32 %s42_s21, %s41_s17  ;;  %s1149_s19 = sshll.u32 %s285_s9, 3 }
  0x4a   : > { %p44_p5 = scmp.eq.s32.totalorder %s43_s16, 0  ;;  %s294_s12 = sadd.s32 %s1848_s29, %s1150_s10 }
  0x4b   : > { %s289_s1 = scalar_lea.vmem [#allocation4], %s1149_s19  ;;  %s1151_s14 = sshll.u32 %s294_s12, 7 }
  0x4c   : > { %s298_s3 = sshll.u32 %s289_s1, 4  ;;  %s296_s23 = scalar_lea.hbm %s2278_s0, %s1151_s14  ;;  %s299_s3 = int_to_ptr.vmem [resolvable:$true] %s298_s3 }
  0x4d   : > { %s2040_s5 = scalar_select %p44_p5, %s1836_s26, %s46_s20  }
  0x4e   : > { %p2049_p2 = pnand %p1569_p0, %p2027_p10  ;;  %s286_s21 = scalar_lea.sflag [#allocation5], %s285_s9 }
  0x4f   : > { %s1737_s10 = scalar_lea.vmem %s299_s3, 128  ;;  %s1863_s1 = smov [#allocation4]  }
  0x50   : > { %p1726_p7 = pneg %p2049_p2  ;;  %p1738_p6 = scmp.ne.s32.totalorder %s299_s3, %s1737_s10 }
  0x51   : > { %s1742_s20 = sshll.u32 %s1863_s1, 4  ;;  %s1743_s20 = int_to_ptr.vmem [resolvable:$false] %s1742_s20 }
  0x52   : > { %p1740_p9 = pnand %p1738_p6, %p1726_p7  ;;  %s1744_s17 = scalar_lea.vmem %s1743_s20, 256 }
  0x53   : > { %p1745_p1 = scmp.lt.s32.totalorder %s299_s3, %s1743_s20  ;;  %p1746_p4 = scmp.lt.s32.totalorder %s1744_s17, %s1737_s10 }
  0x54   : > { %p1741_p12 = pneg %p1740_p9 }
  0x55   : > { %p1747_p8 = por %p1746_p4, %p1745_p1 }
  0x57   : > { %p1748_p11 = pnand %p1747_p8, %p1741_p12 }
  0x59   : > { %1751 = shalt.err (!%p1748_p11)
}
  0x5a   : > { %1561 = dma.hbm_to_vmem [thread:$0]  (!%p2049_p2), %s296_s23, 128, %s299_s3, %s286_s21  }
  0x5b   : > { %p2317_p13 = scmp.ne.s32.totalorder %s2307_s15, 0 }
  0x5c   : > { %s2060_s7 = sand.u32 (!%p2317_p13), 1, %s1832_s25   ;;  %p2318_p10 = scmp.ne.s32.totalorder (!%p2317_p13), %s2304_s13, 0 }
  0x5d   : > { %307 = sbr.rel (%p2317_p13) target bundleno = 643 (0x283), region = 48  ;;  %s1153_s24 = sshll.u32 (!%p2317_p13), %s2060_s7, 3 }
  0x5e   : > { %s310_s14 = scalar_lea.sflag (!%p2317_p13), [#allocation5], %s2060_s7  ;;  %s2064_s22 = scalar_lea.vmem (!%p2317_p13), [#allocation4], %s1153_s24 }
  0x62   : > { %1811 = dma.done.wait (%p2318_p10), %s310_s14, 128  }
  0x63   : > { %1813 = vsyncadd (%p2318_p10), %s310_s14, 4294967168  ;;  %p2319_p0 = scmp.ne.s32.totalorder %s2302_s11, 0 }
  0x65   : > { %1815 = dma.done.wait (%p2319_p0), [#allocation8], 12288  }
  0x66   : > { %1817 = vsyncadd (%p2319_p0), [#allocation8], 4294955008 }
  0x67   : > { %1819 = dma.done.wait (%p2319_p0), [#allocation11], 2048  }
  0x68   : > { %1821 = vsyncadd (%p2319_p0), [#allocation11], 4294965248  ;;  %s2078_s3 = scalar_lea.vmem [#allocation12], %s1153_s24  ;;  %p1158_p5 = scmp.ne.s32.totalorder %s1840_s27, 0 }
  0x6a   : > { %359 = sbr.rel (%p1158_p5) target bundleno = 113 (0x71), region = 68 }
  0x6f   : > { %v1864_v0 = vmov 0.0  }
  0x70   : > { %360 = vst [vmem:[#allocation2] sm:$0xff] %v1864_v0  ;;  %361 = vst [vmem:[#allocation3] sm:$0xff] %v1864_v0 }
  0x71 PF: > { %p1159_p2 = scmp.le.s32.totalorder %s1840_s27, 0 }
  0x73   : > { %365 = sbr.rel (%p1159_p2) target bundleno = 122 (0x7a), region = 72 }
  0x78   : > { %v366_v1 = vld [vmem:[#allocation2 + $0x8] sm:$0xff]  ;;  %v368_v2 = vld [vmem:[#allocation3 + $0x8] sm:$0xff] }
  0x79   : > { %367 = vst [vmem:[#allocation2] sm:$0xff] %v366_v1  ;;  %369 = vst [vmem:[#allocation3] sm:$0xff] %v368_v2 }
  0x7a PF: > { %v405_v3 = vld [vmem:[#allocation7 + $0xf8] sm:$0xff]  ;;  %v1865_v5 = vmov 0.0   ;;  %v404_v6 = vld [vmem:[#allocation7 + $0xf0] sm:$0xff]  ;;  %v403_v8 = vld [vmem:[#allocation7 + $0xe8] sm:$0xff]  ;;  %vm1866_vm0 = vmmov 0   ;;  %s2320_s16 = sld [smem:[#allocation24_spill]] }
  0x7b   : > { %v388_v4 = vld [vmem:[#allocation7 + $0x78] sm:$0xff]  ;;  %1287 = vmatprep.subr.mxu0 %v1865_v5  ;;  %1322 = vmatprep.subr.mxu1 %v1865_v5  ;;  %v387_v7 = vld [vmem:[#allocation7 + $0x70] sm:$0xff]  ;;  %v386_v9 = vld [vmem:[#allocation7 + $0x68] sm:$0xff]  ;;  %s1164_s19 = sshll.u32 %s1844_s28, 1  ;;  %s1028_s1 = sshll.u32 %s2078_s3, 4  ;;  %s1029_s1 = int_to_ptr.vmem [resolvable:$true] %s1028_s1 }
  0x7c   : > { %1288 = vmatpush3.msra.mxu0 %v405_v3  ;;  %1323 = vmatpush3.msra.mxu1 %v388_v4  ;;  %v402_v10 = vld [vmem:[#allocation7 + $0xe0] sm:$0xff]  ;;  %v401_v12 = vld [vmem:[#allocation7 + $0xd8] sm:$0xff]  ;;  %v400_v14 = vld [vmem:[#allocation7 + $0xd0] sm:$0xff]  ;;  %s1024_s21 = sadd.s32 %s1840_s27, %s1164_s19  ;;  %s2322_s24 = sld [smem:[#allocation25_spill]] }
  0x7d   : > { %1289 = vmatprep.subr.mxu0 %v1865_v5  ;;  %1324 = vmatprep.subr.mxu1 %v1865_v5  ;;  %v385_v11 = vld [vmem:[#allocation7 + $0x60] sm:$0xff]  ;;  %v384_v13 = vld [vmem:[#allocation7 + $0x58] sm:$0xff]  ;;  %v383_v15 = vld [vmem:[#allocation7 + $0x50] sm:$0xff]  ;;  %s1165_s10 = sshll.u32 %s1024_s21, 7  ;;  %s1013_s28 = scalar_lea.sflag [#allocation6], %s2060_s7 }
  0x7e   : > { %1290 = vmatpush3.msra.mxu0 %v404_v6  ;;  %1325 = vmatpush3.msra.mxu1 %v387_v7  ;;  %v2093_v16 = vld [vmem:[%s2064_s22] sm:$0xff]  ;;  %v399_v17 = vld [vmem:[#allocation7 + $0xc8] sm:$0xff]  ;;  %v398_v19 = vld [vmem:[#allocation7 + $0xc0] sm:$0xff]  ;;  %s1752_s6 = scalar_lea.vmem %s1029_s1, 128  ;;  %s1867_s11 = smov [#allocation12]  }
  0x7f   : > { %1291 = vmatprep.subr.mxu0 %v1865_v5  ;;  %1326 = vmatprep.subr.mxu1 %v1865_v5  ;;  %v382_v18 = vld [vmem:[#allocation7 + $0x48] sm:$0xff]  ;;  %371 = vst [vmem:[#allocation2 + $0x8] sm:$0xff] %v2093_v16  ;;  %v381_v20 = vld [vmem:[#allocation7 + $0x40] sm:$0xff]  ;;  %v397_v21 = vld [vmem:[#allocation7 + $0xb8] sm:$0xff]  ;;  %p1753_p7 = scmp.ne.s32.totalorder %s1029_s1, %s1752_s6  ;;  %s1756_s27 = sshll.u32 %s1867_s11, 4  ;;  %s1757_s27 = int_to_ptr.vmem [resolvable:$false] %s1756_s27 }
  0x80   : > { %1292 = vmatpush3.msra.mxu0 %v403_v8  ;;  %1327 = vmatpush3.msra.mxu1 %v386_v9  ;;  %v380_v22 = vld [vmem:[#allocation7 + $0x38] sm:$0xff]  ;;  %v396_v23 = vld [vmem:[#allocation7 + $0xb0] sm:$0xff]  ;;  %v395_v25 = vld [vmem:[#allocation7 + $0xa8] sm:$0xff]  ;;  %s1758_s13 = scalar_lea.vmem %s1757_s27, 256  ;;  %p1759_p12 = scmp.lt.s32.totalorder %s1029_s1, %s1757_s27 }
  0x81   : > { %1293 = vmatprep.subr.mxu0 %v1865_v5  ;;  %1328 = vmatprep.subr.mxu1 %v1865_v5  ;;  %v379_v24 = vld [vmem:[#allocation7 + $0x30] sm:$0xff]  ;;  %v378_v26 = vld [vmem:[#allocation7 + $0x28] sm:$0xff]  ;;  %v394_v27 = vld [vmem:[#allocation7 + $0xa0] sm:$0xff]  ;;  %p1754_p6 = pnand %p1753_p7, %p2023_p3  ;;  %p1760_p1 = scmp.lt.s32.totalorder %s1758_s13, %s1752_s6 }
  0x82   : > { %1294 = vmatpush3.msra.mxu0 %v402_v10  ;;  %1329 = vmatpush3.msra.mxu1 %v385_v11  ;;  %v377_v28 = vld [vmem:[#allocation7 + $0x20] sm:$0xff]  ;;  %v393_v29 = vld [vmem:[#allocation7 + $0x98] sm:$0xff]  ;;  %v392_v31 = vld [vmem:[#allocation7 + $0x90] sm:$0xff]  ;;  %s2323_s14 = smov %s2322_s24  ;;  %s1026_s22 = scalar_lea.hbm %s2322_s24, %s1165_s10 }
  0x83   : > { %1295 = vmatprep.subr.mxu0 %v1865_v5  ;;  %1330 = vmatprep.subr.mxu1 %v1865_v5  ;;  %v376_v30 = vld [vmem:[#allocation7 + $0x18] sm:$0xff]  ;;  %v375_v32 = vld [vmem:[#allocation7 + $0x10] sm:$0xff]  ;;  %v391_v33 = vld [vmem:[#allocation7 + $0x88] sm:$0xff]  ;;  %p1755_p9 = pneg %p1754_p6  ;;  %p1761_p4 = por %p1760_p1, %p1759_p12 }
  0x84   : > { %1296 = vmatpush3.msra.mxu0 %v401_v12  ;;  %1331 = vmatpush3.msra.mxu1 %v384_v13  ;;  %v374_v34 = vld [vmem:[#allocation7 + $0x8] sm:$0xff]  ;;  %v390_v35 = vld [vmem:[#allocation7 + $0x80] sm:$0xff]  ;;  %v562_v39 = vld [vmem:[#allocation7 + $0x178] sm:$0xff] }
  0x85   : > { %1297 = vmatprep.subr.mxu0 %v1865_v5  ;;  %1332 = vmatprep.subr.mxu1 %v1865_v5  ;;  %v373_v37 = vld [vmem:[#allocation7] sm:$0xff]  ;;  %v561_v40 = vld [vmem:[#allocation7 + $0x170] sm:$0xff]  ;;  %v560_v41 = vld [vmem:[#allocation7 + $0x168] sm:$0xff]  ;;  %p1762_p8 = pnand %p1761_p4, %p1755_p9 }
  0x86   : > { %1298 = vmatpush3.msra.mxu0 %v400_v14  ;;  %1333 = vmatpush3.msra.mxu1 %v383_v15  ;;  %v389_v36 = vld [vmem:[#allocation2 + $0x6] sm:$0xff]  ;;  %v559_v42 = vld [vmem:[#allocation7 + $0x160] sm:$0xff]  ;;  %v556_v45 = vld [vmem:[#allocation7 + $0x148] sm:$0xff] }
  0x87   : > { %1299 = vmatprep.subr.mxu0 %v1865_v5  ;;  %1334 = vmatprep.subr.mxu1 %v1865_v5  ;;  %v372_v38 = vld [vmem:[#allocation2 + $0x4] sm:$0xff]  ;;  %v555_v46 = vld [vmem:[#allocation7 + $0x140] sm:$0xff]  ;;  %v552_v49 = vld [vmem:[#allocation7 + $0x128] sm:$0xff] }
  0x88   : > { %1300 = vmatpush3.msra.mxu0 %v399_v17  ;;  %1335 = vmatpush3.msra.mxu1 %v382_v18  ;;  %v558_v43 = vld [vmem:[#allocation7 + $0x158] sm:$0xff]  ;;  %v557_v44 = vld [vmem:[#allocation7 + $0x150] sm:$0xff]  ;;  %v551_v50 = vld [vmem:[#allocation7 + $0x120] sm:$0xff] }
  0x89   : > { %1301 = vmatprep.subr.mxu0 %v1865_v5  ;;  %1336 = vmatprep.subr.mxu1 %v1865_v5  ;;  %v554_v47 = vld [vmem:[#allocation7 + $0x138] sm:$0xff]  ;;  %v553_v48 = vld [vmem:[#allocation7 + $0x130] sm:$0xff]  ;;  %v548_v53 = vld [vmem:[#allocation7 + $0x108] sm:$0xff] }
  0x8a   : > { %1302 = vmatpush3.msra.mxu0 %v398_v19  ;;  %1337 = vmatpush3.msra.mxu1 %v381_v20  ;;  %v550_v51 = vld [vmem:[#allocation7 + $0x118] sm:$0xff]  ;;  %v549_v52 = vld [vmem:[#allocation7 + $0x110] sm:$0xff]  ;;  %v547_v54 = vld [vmem:[#allocation7 + $0x100] sm:$0xff] }
  0x8b   : > { %1303 = vmatprep.subr.mxu0 %v1865_v5  ;;  %1338 = vmatprep.subr.mxu1 %v1865_v5  ;;  %v677_v55 = vld [vmem:[#allocation9 + $0xf8] sm:$0xff]  ;;  %v676_v57 = vld [vmem:[#allocation9 + $0xf0] sm:$0xff]  ;;  %v675_v59 = vld [vmem:[#allocation9 + $0xe8] sm:$0xff] }
  0x8c   : > { %1304 = vmatpush3.msra.mxu0 %v397_v21  ;;  %1339 = vmatpush3.msra.mxu1 %v380_v22  ;;  %v660_v56 = vld [vmem:[#allocation9 + $0x78] sm:$0xff]  ;;  %v659_v58 = vld [vmem:[#allocation9 + $0x70] sm:$0xff]  ;;  %v658_v60 = vld [vmem:[#allocation9 + $0x68] sm:$0xff] }
  0x8d   : > { %1305 = vmatprep.subr.mxu0 %v1865_v5  ;;  %1340 = vmatprep.subr.mxu1 %v1865_v5  ;;  %v674_v61 = vld [vmem:[#allocation9 + $0xe0] sm:$0xff]  ;;  %v673_v63 = vld [vmem:[#allocation9 + $0xd8] sm:$0xff]  ;;  %v672_v1 = vld [vmem:[#allocation9 + $0xd0] sm:$0xff] }
  0x8e   : > { %1306 = vmatpush3.msra.mxu0 %v396_v23  ;;  %1341 = vmatpush3.msra.mxu1 %v379_v24  ;;  %v657_v62 = vld [vmem:[#allocation9 + $0x60] sm:$0xff]  ;;  %v656_v0 = vld [vmem:[#allocation9 + $0x58] sm:$0xff]  ;;  %v655_v2 = vld [vmem:[#allocation9 + $0x50] sm:$0xff] }
  0x8f   : > { %1307 = vmatprep.subr.mxu0 %v1865_v5  ;;  %1342 = vmatprep.subr.mxu1 %v1865_v5  ;;  %v671_v3 = vld [vmem:[#allocation9 + $0xc8] sm:$0xff]  ;;  %v670_v6 = vld [vmem:[#allocation9 + $0xc0] sm:$0xff]  ;;  %v669_v8 = vld [vmem:[#allocation9 + $0xb8] sm:$0xff] }
  0x90   : > { %1308 = vmatpush3.msra.mxu0 %v395_v25  ;;  %1343 = vmatpush3.msra.mxu1 %v378_v26  ;;  %v654_v4 = vld [vmem:[#allocation9 + $0x48] sm:$0xff]  ;;  %v653_v7 = vld [vmem:[#allocation9 + $0x40] sm:$0xff]  ;;  %v652_v9 = vld [vmem:[#allocation9 + $0x38] sm:$0xff] }
  0x91   : > { %1309 = vmatprep.subr.mxu0 %v1865_v5  ;;  %1344 = vmatprep.subr.mxu1 %v1865_v5  ;;  %v668_v10 = vld [vmem:[#allocation9 + $0xb0] sm:$0xff]  ;;  %v667_v12 = vld [vmem:[#allocation9 + $0xa8] sm:$0xff]  ;;  %v666_v14 = vld [vmem:[#allocation9 + $0xa0] sm:$0xff] }
  0x92   : > { %1310 = vmatpush3.msra.mxu0 %v394_v27  ;;  %1345 = vmatpush3.msra.mxu1 %v377_v28  ;;  %v651_v11 = vld [vmem:[#allocation9 + $0x30] sm:$0xff]  ;;  %v650_v13 = vld [vmem:[#allocation9 + $0x28] sm:$0xff]  ;;  %v649_v15 = vld [vmem:[#allocation9 + $0x20] sm:$0xff] }
  0x93   : > { %1311 = vmatprep.subr.mxu0 %v1865_v5  ;;  %1346 = vmatprep.subr.mxu1 %v1865_v5  ;;  %v665_v17 = vld [vmem:[#allocation9 + $0x98] sm:$0xff]  ;;  %v664_v19 = vld [vmem:[#allocation9 + $0x90] sm:$0xff]  ;;  %v663_v21 = vld [vmem:[#allocation9 + $0x88] sm:$0xff] }
  0x94   : > { %1312 = vmatpush3.msra.mxu0 %v393_v29  ;;  %1347 = vmatpush3.msra.mxu1 %v376_v30  ;;  %v648_v18 = vld [vmem:[#allocation9 + $0x18] sm:$0xff]  ;;  %v647_v20 = vld [vmem:[#allocation9 + $0x10] sm:$0xff]  ;;  %v646_v22 = vld [vmem:[#allocation9 + $0x8] sm:$0xff] }
  0x95   : > { %1313 = vmatprep.subr.mxu0 %v1865_v5  ;;  %1348 = vmatprep.subr.mxu1 %v1865_v5  ;;  %v662_v23 = vld [vmem:[#allocation9 + $0x80] sm:$0xff] }
  0x96   : > { %1314 = vmatpush3.msra.mxu0 %v392_v31  ;;  %1349 = vmatpush3.msra.mxu1 %v375_v32  ;;  %v645_v24 = vld [vmem:[#allocation9] sm:$0xff]  ;;  %v1160_v31 = vld [vmem:[%s2280_s2] ss:$0 sm:$0xff] }
  0x97   : > { %1315 = vmatprep.subr.mxu0 %v1865_v5  ;;  %1350 = vmatprep.subr.mxu1 %v1865_v5 }
  0x98   : > { %1316 = vmatpush3.msra.mxu0 %v391_v33  ;;  %1351 = vmatpush3.msra.mxu1 %v374_v34 }
  0x99   : > { %1317 = vmatprep.subr.mxu0 %v1865_v5  ;;  %1319 = vmatprep.mubr.msk.f32.mxu0 %vm1866_vm0, %v1865_v5 }
  0x9a   : > { %1318 = vmatpush3.msra.mxu0 %v390_v35  ;;  %1352 = vmatprep.subr.mxu1 %v1865_v5 }
  0x9b   : > { %1320 = vmatmul.mubr.f32.vlgmr.msra.gmra.mxu0 %v389_v36  ;;  %1353 = vmatpush3.msra.mxu1 %v373_v37  ;;  %v834_v36 = vld [vmem:[#allocation9 + $0x178] sm:$0xff] }
  0x9c   : > { %1354 = vmatprep.mubr.msk.f32.mxu1 %vm1866_vm0, %v1865_v5  ;;  %1357 = vmatprep.subr.mxu0 %v1865_v5  ;;  %v931_v37 = vld [vmem:[#allocation10 + $0x78] sm:$0xff] }
  0x9d   : > { %1355 = vmatmul.mubr.f32.vlgmr.msra.gmra.mxu1 %v372_v38  ;;  %1358 = vmatpush3.msra.mxu0 %v562_v39 }
  0x9e   : > { %1359 = vmatprep.subr.mxu0 %v1865_v5  ;;  %1389 = vmatprep.mubr.msk.f32.mxu0 %vm1866_vm0, %v1865_v5 }
  0x9f   : > { %1360 = vmatpush3.msra.mxu0 %v561_v40  ;;  %1392 = vmatprep.subr.mxu1 %v1865_v5  ;;  %v833_v40 = vld [vmem:[#allocation9 + $0x170] sm:$0xff] }
  0xa0   : > { %1361 = vmatprep.subr.mxu0 %v1865_v5  ;;  %1424 = vmatprep.mubr.msk.f32.mxu1 %vm1866_vm0, %v1865_v5 }
  0xa1   : > { %1362 = vmatpush3.msra.mxu0 %v560_v41  ;;  %1393 = vmatpush3.msra.mxu1 %v677_v55  ;;  %v930_v41 = vld [vmem:[#allocation10 + $0x70] sm:$0xff]  ;;  %v923_v55 = vld [vmem:[#allocation10 + $0x38] sm:$0xff] }
  0xa2   : > { %1363 = vmatprep.subr.mxu0 %v1865_v5  ;;  %1394 = vmatprep.subr.mxu1 %v1865_v5 }
  0xa3   : > { %1364 = vmatpush3.msra.mxu0 %v559_v42  ;;  %1395 = vmatpush3.msra.mxu1 %v676_v57  ;;  %v832_v42 = vld [vmem:[#allocation9 + $0x168] sm:$0xff]  ;;  %v922_v57 = vld [vmem:[#allocation10 + $0x30] sm:$0xff] }
  0xa4   : > { %1365 = vmatprep.subr.mxu0 %v1865_v5  ;;  %1396 = vmatprep.subr.mxu1 %v1865_v5 }
  0xa5   : > { %1366 = vmatpush3.msra.mxu0 %v558_v43  ;;  %1397 = vmatpush3.msra.mxu1 %v675_v59  ;;  %v929_v43 = vld [vmem:[#allocation10 + $0x68] sm:$0xff] }
  0xa6   : > { %1367 = vmatprep.subr.mxu0 %v1865_v5  ;;  %1398 = vmatprep.subr.mxu1 %v1865_v5  ;;  %v921_v59 = vld [vmem:[#allocation10 + $0x28] sm:$0xff] }
  0xa7   : > { %1368 = vmatpush3.msra.mxu0 %v557_v44  ;;  %1399 = vmatpush3.msra.mxu1 %v674_v61  ;;  %v831_v44 = vld [vmem:[#allocation9 + $0x160] sm:$0xff] }
  0xa8   : > { %1369 = vmatprep.subr.mxu0 %v1865_v5  ;;  %1400 = vmatprep.subr.mxu1 %v1865_v5  ;;  %v920_v61 = vld [vmem:[#allocation10 + $0x20] sm:$0xff] }
  0xa9   : > { %1370 = vmatpush3.msra.mxu0 %v556_v45  ;;  %1401 = vmatpush3.msra.mxu1 %v673_v63  ;;  %v928_v45 = vld [vmem:[#allocation10 + $0x60] sm:$0xff]  ;;  %v919_v63 = vld [vmem:[#allocation10 + $0x18] sm:$0xff] }
  0xaa   : > { %1371 = vmatprep.subr.mxu0 %v1865_v5  ;;  %1402 = vmatprep.subr.mxu1 %v1865_v5 }
  0xab   : > { %1372 = vmatpush3.msra.mxu0 %v555_v46  ;;  %1403 = vmatpush3.msra.mxu1 %v672_v1  ;;  %v830_v46 = vld [vmem:[#allocation9 + $0x158] sm:$0xff]  ;;  %v918_v1 = vld [vmem:[#allocation10 + $0x10] sm:$0xff] }
  0xac   : > { %1373 = vmatprep.subr.mxu0 %v1865_v5  ;;  %1404 = vmatprep.subr.mxu1 %v1865_v5 }
  0xad   : > { %1374 = vmatpush3.msra.mxu0 %v554_v47  ;;  %1405 = vmatpush3.msra.mxu1 %v671_v3  ;;  %v927_v47 = vld [vmem:[#allocation10 + $0x58] sm:$0xff]  ;;  %v917_v3 = vld [vmem:[#allocation10 + $0x8] sm:$0xff] }
  0xae   : > { %1375 = vmatprep.subr.mxu0 %v1865_v5  ;;  %1406 = vmatprep.subr.mxu1 %v1865_v5 }
  0xaf   : > { %1376 = vmatpush3.msra.mxu0 %v553_v48  ;;  %1407 = vmatpush3.msra.mxu1 %v670_v6  ;;  %v829_v48 = vld [vmem:[#allocation9 + $0x150] sm:$0xff]  ;;  %v916_v6 = vld [vmem:[#allocation10] sm:$0xff] }
  0xb0   : > { %1377 = vmatprep.subr.mxu0 %v1865_v5  ;;  %1408 = vmatprep.subr.mxu1 %v1865_v5 }
  0xb1   : > { %1378 = vmatpush3.msra.mxu0 %v552_v49  ;;  %1409 = vmatpush3.msra.mxu1 %v669_v8  ;;  %v926_v49 = vld [vmem:[#allocation10 + $0x50] sm:$0xff] }
  0xb2   : > { %1379 = vmatprep.subr.mxu0 %v1865_v5  ;;  %1410 = vmatprep.subr.mxu1 %v1865_v5 }
  0xb3   : > { %1380 = vmatpush3.msra.mxu0 %v551_v50  ;;  %1411 = vmatpush3.msra.mxu1 %v668_v10  ;;  %v828_v50 = vld [vmem:[#allocation9 + $0x148] sm:$0xff] }
  0xb4   : > { %1381 = vmatprep.subr.mxu0 %v1865_v5  ;;  %1412 = vmatprep.subr.mxu1 %v1865_v5 }
  0xb5   : > { %1382 = vmatpush3.msra.mxu0 %v550_v51  ;;  %1413 = vmatpush3.msra.mxu1 %v667_v12  ;;  %v925_v51 = vld [vmem:[#allocation10 + $0x48] sm:$0xff] }
  0xb6   : > { %1383 = vmatprep.subr.mxu0 %v1865_v5  ;;  %1414 = vmatprep.subr.mxu1 %v1865_v5 }
  0xb7   : > { %1384 = vmatpush3.msra.mxu0 %v549_v52  ;;  %1415 = vmatpush3.msra.mxu1 %v666_v14  ;;  %v827_v52 = vld [vmem:[#allocation9 + $0x140] sm:$0xff]  ;;  %v1162_v14 = vld [vmem:[%s2320_s16] ss:$0 sm:$0xff] }
  0xb8   : > { %1385 = vmatprep.subr.mxu0 %v1865_v5  ;;  %1416 = vmatprep.subr.mxu1 %v1865_v5 }
  0xb9   : > { %1386 = vmatpush3.msra.mxu0 %v548_v53  ;;  %1417 = vmatpush3.msra.mxu1 %v665_v17  ;;  %v924_v53 = vld [vmem:[#allocation10 + $0x40] sm:$0xff] }
  0xba   : > { %1387 = vmatprep.subr.mxu0 %v1865_v5  ;;  %1418 = vmatprep.subr.mxu1 %v1865_v5 }
  0xbb   : > { %1388 = vmatpush3.msra.mxu0 %v547_v54  ;;  %1419 = vmatpush3.msra.mxu1 %v664_v19  ;;  %v826_v54 = vld [vmem:[#allocation9 + $0x138] sm:$0xff] }
  0xbc   : > { %1390 = vmatmul.mubr.f32.vlgmr.msra.gmra.mxu0 %v2093_v16  ;;  %1427 = vmatprep.subr.mxu0 %v1865_v5 }
  0xbd   : > { %1459 = vmatprep.mubr.msk.f32.mxu0 %vm1866_vm0, %v1865_v5  ;;  %1428 = vmatpush3.msra.mxu0 %v660_v56  ;;  %v825_v56 = vld [vmem:[#allocation9 + $0x130] sm:$0xff] }
  0xbe   : > { %1429 = vmatprep.subr.mxu0 %v1865_v5  ;;  %1420 = vmatprep.subr.mxu1 %v1865_v5 }
  0xbf   : > { %1430 = vmatpush3.msra.mxu0 %v659_v58  ;;  %1421 = vmatpush3.msra.mxu1 %v663_v21  ;;  %v824_v58 = vld [vmem:[#allocation9 + $0x128] sm:$0xff] }
  0xc0   : > { %1431 = vmatprep.subr.mxu0 %v1865_v5  ;;  %1422 = vmatprep.subr.mxu1 %v1865_v5 }
  0xc1   : > { %1432 = vmatpush3.msra.mxu0 %v658_v60  ;;  %1423 = vmatpush3.msra.mxu1 %v662_v23  ;;  %v823_v60 = vld [vmem:[#allocation9 + $0x120] sm:$0xff] }
  0xc2   : > { %1433 = vmatprep.subr.mxu0 %v1865_v5  ;;  %1462 = vmatprep.subr.mxu1 %v1865_v5 }
  0xc3   : > { %1434 = vmatpush3.msra.mxu0 %v657_v62  ;;  %v822_v62 = vld [vmem:[#allocation9 + $0x118] sm:$0xff] }
  0xc4   : > { %1435 = vmatprep.subr.mxu0 %v1865_v5 }
  0xc5   : > { %1436 = vmatpush3.msra.mxu0 %v656_v0  ;;  %v821_v0 = vld [vmem:[#allocation9 + $0x110] sm:$0xff] }
  0xc6   : > { %1437 = vmatprep.subr.mxu0 %v1865_v5 }
  0xc7   : > { %1438 = vmatpush3.msra.mxu0 %v655_v2  ;;  %v820_v2 = vld [vmem:[#allocation9 + $0x108] sm:$0xff] }
  0xc8   : > { %1439 = vmatprep.subr.mxu0 %v1865_v5 }
  0xc9   : > { %1440 = vmatpush3.msra.mxu0 %v654_v4  ;;  %v819_v4 = vld [vmem:[#allocation9 + $0x100] sm:$0xff] }
  0xca   : > { %1441 = vmatprep.subr.mxu0 %v1865_v5 }
  0xcb   : > { %1442 = vmatpush3.msra.mxu0 %v653_v7 }
  0xcc   : > { %1443 = vmatprep.subr.mxu0 %v1865_v5 }
  0xcd   : > { %1444 = vmatpush3.msra.mxu0 %v652_v9 }
  0xce   : > { %1445 = vmatprep.subr.mxu0 %v1865_v5 }
  0xcf   : > { %1446 = vmatpush3.msra.mxu0 %v651_v11 }
  0xd0   : > { %1447 = vmatprep.subr.mxu0 %v1865_v5 }
  0xd1   : > { %1448 = vmatpush3.msra.mxu0 %v650_v13  ;;  %v1161_v13 = vld [vmem:[%s2282_s4] ss:$0 sm:$0xff] }
  0xd2   : > { %1449 = vmatprep.subr.mxu0 %v1865_v5 }
  0xd3   : > { %1450 = vmatpush3.msra.mxu0 %v649_v15 }
  0xd4   : > { %1451 = vmatprep.subr.mxu0 %v1865_v5 }
  0xd5   : > { %1452 = vmatpush3.msra.mxu0 %v648_v18 }
  0xd6   : > { %1453 = vmatprep.subr.mxu0 %v1865_v5 }
  0xd7   : > { %1454 = vmatpush3.msra.mxu0 %v647_v20 }
  0xd8   : > { %1455 = vmatprep.subr.mxu0 %v1865_v5 }
  0xd9   : > { %1456 = vmatpush3.msra.mxu0 %v646_v22 }
  0xda   : > { %1457 = vmatprep.subr.mxu0 %v1865_v5 }
  0xdb   : > { %1458 = vmatpush3.msra.mxu0 %v645_v24 }
  0xdc   : > { %1497 = vmatprep.subr.mxu0 %v1865_v5 }
 0x15b   : > { %v472_v25 = vpop.f32.mrf.mxu0 }
 0x15d   : > { %v542_v26 = vpop.f32.mrf.mxu1  ;;  %v1321_v27 = vpop.f32.mrf.mxu0 }
 0x15e   : > { %v543_v29 = vadd.f32 %v542_v26, %v472_v25 }
 0x15f   : > { %v1356_v28 = vpop.f32.mrf.mxu1 }
 0x17c   : > { %v629_v30 = vpop.f32.mrf.mxu0 }
 0x17d   : > { %v633_v32 = vadd.f32 %v629_v30, %v543_v29 }
 0x17e   : > { %v1391_v33 = vpop.f32.mrf.mxu0 }
 0x17f   : > { %v2182_v34 = vadd.f32 %v1160_v31, %v633_v32 }
 0x181   : > { %v642_v35 = vmax.f32 %v2182_v34, 0.0 }
 0x183   : > { %643 = vst [vmem:[#allocation3 + $0x8] sm:$0xff] %v642_v35 }
 0x18a   : > { %v661_v38 = vld [vmem:[#allocation3 + $0x6] sm:$0xff] }
 0x18b   : > { %v644_v39 = vld [vmem:[#allocation3 + $0x4] sm:$0xff]  ;;  %1425 = vmatmul.mubr.f32.vlgmr.msra.gmra.mxu1 %v661_v38 }
 0x18c   : > { %1460 = vmatmul.mubr.f32.vlgmr.msra.gmra.mxu0 %v644_v39  ;;  %1463 = vmatpush3.msra.mxu1 %v834_v36 }
 0x18d   : > { %1498 = vmatpush3.msra.mxu0 %v931_v37  ;;  %1464 = vmatprep.subr.mxu1 %v1865_v5 }
 0x18e   : > { %1499 = vmatprep.subr.mxu0 %v1865_v5  ;;  %1465 = vmatpush3.msra.mxu1 %v833_v40 }
 0x18f   : > { %1500 = vmatpush3.msra.mxu0 %v930_v41  ;;  %1466 = vmatprep.subr.mxu1 %v1865_v5 }
 0x190   : > { %1501 = vmatprep.subr.mxu0 %v1865_v5  ;;  %1467 = vmatpush3.msra.mxu1 %v832_v42 }
 0x191   : > { %1502 = vmatpush3.msra.mxu0 %v929_v43  ;;  %1468 = vmatprep.subr.mxu1 %v1865_v5 }
 0x192   : > { %1503 = vmatprep.subr.mxu0 %v1865_v5  ;;  %1469 = vmatpush3.msra.mxu1 %v831_v44 }
 0x193   : > { %1504 = vmatpush3.msra.mxu0 %v928_v45  ;;  %1470 = vmatprep.subr.mxu1 %v1865_v5 }
 0x194   : > { %1505 = vmatprep.subr.mxu0 %v1865_v5  ;;  %1471 = vmatpush3.msra.mxu1 %v830_v46 }
 0x195   : > { %1506 = vmatpush3.msra.mxu0 %v927_v47  ;;  %1472 = vmatprep.subr.mxu1 %v1865_v5 }
 0x196   : > { %1507 = vmatprep.subr.mxu0 %v1865_v5  ;;  %1473 = vmatpush3.msra.mxu1 %v829_v48 }
 0x197   : > { %1508 = vmatpush3.msra.mxu0 %v926_v49  ;;  %1474 = vmatprep.subr.mxu1 %v1865_v5 }
 0x198   : > { %1509 = vmatprep.subr.mxu0 %v1865_v5  ;;  %1475 = vmatpush3.msra.mxu1 %v828_v50 }
 0x199   : > { %1510 = vmatpush3.msra.mxu0 %v925_v51  ;;  %1476 = vmatprep.subr.mxu1 %v1865_v5 }
 0x19a   : > { %1511 = vmatprep.subr.mxu0 %v1865_v5  ;;  %1477 = vmatpush3.msra.mxu1 %v827_v52 }
 0x19b   : > { %1512 = vmatpush3.msra.mxu0 %v924_v53  ;;  %1478 = vmatprep.subr.mxu1 %v1865_v5 }
 0x19c   : > { %1513 = vmatprep.subr.mxu0 %v1865_v5  ;;  %1479 = vmatpush3.msra.mxu1 %v826_v54 }
 0x19d   : > { %1514 = vmatpush3.msra.mxu0 %v923_v55  ;;  %1480 = vmatprep.subr.mxu1 %v1865_v5 }
 0x19e   : > { %1515 = vmatprep.subr.mxu0 %v1865_v5  ;;  %1481 = vmatpush3.msra.mxu1 %v825_v56 }
 0x19f   : > { %1516 = vmatpush3.msra.mxu0 %v922_v57  ;;  %1482 = vmatprep.subr.mxu1 %v1865_v5 }
 0x1a0   : > { %1517 = vmatprep.subr.mxu0 %v1865_v5  ;;  %1483 = vmatpush3.msra.mxu1 %v824_v58 }
 0x1a1   : > { %1518 = vmatpush3.msra.mxu0 %v921_v59  ;;  %1484 = vmatprep.subr.mxu1 %v1865_v5 }
 0x1a2   : > { %1519 = vmatprep.subr.mxu0 %v1865_v5  ;;  %1485 = vmatpush3.msra.mxu1 %v823_v60 }
 0x1a3   : > { %1520 = vmatpush3.msra.mxu0 %v920_v61  ;;  %1486 = vmatprep.subr.mxu1 %v1865_v5 }
 0x1a4   : > { %1521 = vmatprep.subr.mxu0 %v1865_v5  ;;  %1487 = vmatpush3.msra.mxu1 %v822_v62 }
 0x1a5   : > { %1522 = vmatpush3.msra.mxu0 %v919_v63  ;;  %1488 = vmatprep.subr.mxu1 %v1865_v5 }
 0x1a6   : > { %1523 = vmatprep.subr.mxu0 %v1865_v5  ;;  %1489 = vmatpush3.msra.mxu1 %v821_v0 }
 0x1a7   : > { %1524 = vmatpush3.msra.mxu0 %v918_v1  ;;  %1490 = vmatprep.subr.mxu1 %v1865_v5 }
 0x1a8   : > { %1525 = vmatprep.subr.mxu0 %v1865_v5  ;;  %1491 = vmatpush3.msra.mxu1 %v820_v2 }
 0x1a9   : > { %1494 = vmatprep.mubr.msk.f32.mxu1 %vm1866_vm0, %v1865_v5  ;;  %1492 = vmatprep.subr.mxu1 %v1865_v5 }
 0x1aa   : > { %1526 = vmatpush3.msra.mxu0 %v917_v3  ;;  %1493 = vmatpush3.msra.mxu1 %v819_v4 }
 0x1ab   : > { %1527 = vmatprep.subr.mxu0 %v1865_v5  ;;  %1495 = vmatmul.mubr.f32.vlgmr.msra.gmra.mxu1 %v642_v35 }
 0x1ac   : > { %1528 = vmatpush3.msra.mxu0 %v916_v6  ;;  %1529 = vmatprep.mubr.msk.f32.mxu0 %vm1866_vm0, %v1865_v5 }
 0x1ad   : > { %1530 = vmatmul.mubr.f32.vlgmr.msra.gmra.mxu0 %v2093_v16 }
 0x24b   : > { %v744_v7 = vpop.f32.mrf.mxu1 }
 0x24c   : > { %v814_v8 = vpop.f32.mrf.mxu0 }
 0x24d   : > { %v1426_v9 = vpop.f32.mrf.mxu1  ;;  %v815_v11 = vadd.f32 %v814_v8, %v744_v7 }
 0x24e   : > { %v1461_v10 = vpop.f32.mrf.mxu0 }
 0x26b   : > { %v901_v12 = vpop.f32.mrf.mxu1 }
 0x26c   : > { %v905_v5 = vadd.f32 %v901_v12, %v815_v11 }
 0x26d   : > { %v1496_v16 = vpop.f32.mrf.mxu1  ;;  %v1005_v15 = vpop.f32.mrf.mxu0 }
 0x26e   : > { %v913_v17 = vadd.f32 %v1161_v13, %v905_v5  ;;  %v1006_v18 = vadd.f32 %v1162_v14, %v1005_v15 }
 0x26f   : > { %v1531_v19 = vpop.f32.mrf.mxu0 }
 0x270   : > { %v914_v20 = vmax.f32 %v913_v17, 0.0 }
 0x272   : > { %v1009_v21 = vadd.f32 %v1006_v18, %v914_v20 }
 0x274   : > { %v1010_v22 = vmax.f32 %v1009_v21, 0.0 }
 0x276   : > { %1011 = vst [vmem:[%s2078_s3] sm:$0xff] %v1010_v22 }
 0x277   : > { %1765 = shalt.err (!%p1762_p8)
}
 0x278   : > { %s1766_s15 = scalar_lea.hbm %s1026_s22, 128  ;;  %s1770_s23 = scalar_lea.hbm %s2323_s14, 512 }
 0x279   : > { %p1767_p11 = scmp.ne.s32.totalorder %s1026_s22, %s1766_s15  ;;  %p1771_p0 = scmp.lt.s32.totalorder %s1026_s22, %s2323_s14 }
 0x27a   : > { %p1772_p5 = scmp.lt.s32.totalorder %s1770_s23, %s1766_s15 }
 0x27b   : > { %p1768_p13 = pnand %p1767_p11, %p2023_p3 }
 0x27c   : > { %p1773_p2 = por %p1772_p5, %p1771_p0 }
 0x27d   : > { %p1769_p10 = pneg %p1768_p13 }
 0x27f   : > { %p1774_p7 = pnand %p1773_p2, %p1769_p10 }
 0x281   : > { %1777 = shalt.err (!%p1774_p7)
}
 0x282   : > { %1546 = dma.vmem_to_hbm [thread:$0]  (%p2023_p3), %s1029_s1, 128, %s1026_s22, %s1013_s28  }
 0x283 PF: > { %s2324_s19 = sld [smem:[#allocation17_spill]]  ;;  %p1573_p6 = scmp.ge.s32.totalorder %s1856_s8, 2 }
 0x284   : > { %s2325_s21 = sld [smem:[#allocation18_spill]] }
 0x289   : > { %s1040_s10 = sand.u32 1, %s2324_s19  }
 0x28a   : > { %p2326_p9 = scmp.ne.s32.totalorder %s2325_s21, 0  ;;  %s1041_s20 = scalar_lea.sflag [#allocation6], %s1040_s10 }
 0x28c   : > { %p1563_p12 = pnand %p1573_p6, %p2326_p9 }
 0x28e   : > { %p1564_p1 = pneg %p1563_p12 }
 0x290   : > { %1823 = dma.done.wait (%p1564_p1), %s1041_s20, 128  }
 0x291   : > { %1825 = vsyncadd (%p1564_p1), %s1041_s20, 4294967168  ;;  %s25_s8 = sadd.s32 1, %s1856_s8   ;;  %s2327_s12 = sld [smem:[#allocation19_spill]] }
 0x292   : > { %p22_p4 = scmp.ge.s32.totalorder %s25_s8, 6   ;;  %s2328_s24 = smov %s1832_s25 }
 0x293   : > { %s2329_s25 = smov %s1836_s26  ;;  %s2330_s26 = smov %s2040_s5 }
 0x294   : > { %s2331_s27 = smov %s1848_s29  ;;  %s2332_s28 = smov %s1852_s30 }
 0x295   : > { %s2334_s30 = smov %s2340_s18  ;;  %24 = sbr.rel (!%p22_p4) target bundleno = 15 (0xf), region = 113 }
 0x297   : > { %s2333_s29 = smov %s2327_s12 }
 0x29a   :  { %1046 = vsyncpa [#allocation5], 1 }
 0x29b   :  { %1048 = vsyncpa [#allocation5 + $0x1], 1 }
 0x29c   :  { %1049 = vsyncpa [#allocation8], 1 }
 0x29d   :  { %1050 = vsyncpa [#allocation11], 1 }
 0x29e   :  { %1051 = vsyncpa [#allocation6], 1 }
 0x29f   :  { %1053 = vsyncpa [#allocation6 + $0x1], 1 }

</bundles_post_ra>
